<compile_context>
chip_gen: v7x
topology: tpu7x:2x2x1
jax: 0.10.0
libtpu: 0.0.40
codegen_flags: <defaults>
</compile_context>

<pallas_src>
import functools

import jax
import jax.numpy as jnp
from jax.experimental import pallas as pl
from jax.experimental.pallas import tpu as pltpu


def _round_up(v, m):
    return ((v + m - 1) // m) * m


def _segment_readout_kernel(x_ref, seg_ref, sum_ref, cnt_ref, *,
                            n_total, num_graphs, tile, tiles_per_core):
    c = pl.program_id(0)   # core (parallel) axis
    t = pl.program_id(1)   # node-tile (reduction) axis

    @pl.when(t == 0)
    def _init():
        sum_ref[...] = jnp.zeros_like(sum_ref)
        cnt_ref[...] = jnp.zeros_like(cnt_ref)

    # One-hot membership matrix, built once, cast once (f32).  Padded rows
    # carry segment id -1 and never match a graph id in [0, num_graphs).
    seg = seg_ref[...]                                                 # (1, TN)
    gids = jax.lax.broadcasted_iota(jnp.int32, (num_graphs, tile), 0)  # (B, TN)
    oh32 = (seg == gids).astype(jnp.float32)                           # (B, TN)

    # Per-graph node counts: cross-lane reduce (XLU slot), not the MXU.
    cnt_ref[...] += jnp.sum(oh32, axis=1, keepdims=True)               # (B, 1)

    if x_ref.dtype == jnp.float32:
        lhs = oh32
        prec = jax.lax.Precision.HIGHEST     # exact 0/1 lhs -> f32-exact sums
    else:
        lhs = oh32.astype(x_ref.dtype)       # single extra cast for bf16 feats
        prec = jax.lax.Precision.DEFAULT

    def _accumulate(x):
        sum_ref[...] += jax.lax.dot_general(
            lhs, x,
            dimension_numbers=(((1,), (0,)), ((), ())),
            precision=prec,
            preferred_element_type=jnp.float32)                        # (B, D)

    # Ragged/padded tiles only: mask rows past the true node count so stale
    # VMEM (possibly NaN/Inf) never poisons 0 * x.  Interior tiles skip this.
    row_start = (c * tiles_per_core + t) * tile
    needs_mask = row_start + tile > n_total

    @pl.when(jnp.logical_not(needs_mask))
    def _hot():
        _accumulate(x_ref[...])

    @pl.when(needs_mask)
    def _cold():
        row = row_start + jax.lax.broadcasted_iota(jnp.int32, (tile, 1), 0)
        _accumulate(jnp.where(row < n_total, x_ref[...], 0))


def reduce_readout(node_feat, segment_ids, num_graphs, *, op="mean",
                   node_tile=None, num_cores=2):
    """Pallas equivalent of ReduceReadOut(op, field=...).forward(g).

    Args:
      node_feat:   [N, D] float array of node (or edge) features.
      segment_ids: [N] int graph index of each row (values in [0, num_graphs)).
      num_graphs:  static number of graphs in the batch.
      op:          'mean' or 'sum'.
      node_tile:   rows per grid step (auto, D-aware, if None; rounded to 128).
      num_cores:   leading parallel split (2 uses both v7x TCs; harmless on 1-TC).

    Returns:
      [num_graphs, D] reduced features (dtype of node_feat).
      Note: empty graphs return 0 for 'mean' (denominator clamped to 1).
    """
    assert op in ("mean", "sum")
    n, d = node_feat.shape
    assert n >= 1 and num_graphs >= 1
    esize = jnp.dtype(node_feat.dtype).itemsize

    # Generation-aware VMEM budget (v5e/v6e: 128 MiB, v7x: 64 MiB per TC).
    try:
        phys_vmem = int(getattr(pltpu.get_tpu_info(), "vmem_capacity_bytes",
                                64 * 1024 * 1024))
    except Exception:  # pragma: no cover - conservative fallback
        phys_vmem = 64 * 1024 * 1024

    b_pad = _round_up(num_graphs, 8)
    per_row = (2 * d * esize        # node_feat double buffer
               + 2 * 8 * 4          # segment-id double buffer (sublane padded)
               + 3 * b_pad * 4      # onehot f32 (+ bf16 copy) + gids iota
               + d * 4)             # masked-x temporary (ragged cold path)
    fixed = (2 * b_pad * d * 4      # double-buffered partial-sum output block
             + 2 * b_pad * 128 * 4)  # double-buffered count block (lane padded)
    budget = int(phys_vmem * 0.55)
    max_rows = max(128, ((budget - fixed) // per_row) // 128 * 128)

    # D-aware tile: target ~4 MiB of node_feat streamed per grid step so the
    # ~0.35 us/step overhead is amortized even for narrow D.
    if node_tile is None:
        tile = max(512, (4 * 1024 * 1024 // (d * esize)) // 128 * 128)
    else:
        tile = max(128, (node_tile // 128) * 128)
    tile = min(tile, max_rows)
    tile = min(tile, _round_up(n, 128))   # never larger than the problem
    # tile is always a multiple of 128 -> valid sublane tiling for any dtype.

    num_row_tiles = pl.cdiv(n, tile)
    tiles_per_core = pl.cdiv(num_row_tiles, num_cores)
    n_pad = num_cores * tiles_per_core * tile
    last_block = num_row_tiles - 1

    # Only the cheap 1-D segment-id array is padded (with -1); node_feat is
    # never copied or padded in HBM.
    seg = segment_ids.astype(jnp.int32)
    if n_pad != n:
        seg = jnp.pad(seg, (0, n_pad - n), constant_values=-1)
    seg_row = seg.reshape(1, n_pad)

    kernel = functools.partial(
        _segment_readout_kernel, n_total=n, num_graphs=num_graphs,
        tile=tile, tiles_per_core=tiles_per_core)

    def x_map(c, t):
        # Clamp so the padded tail tiles of the last core stay in bounds
        # (their segment ids are -1, so they contribute nothing anyway).
        return (jnp.minimum(c * tiles_per_core + t, last_block), 0)

    def seg_map(c, t):
        return (0, c * tiles_per_core + t)

    vmem_need = fixed + tile * per_row
    vmem_limit = int(max(min(2 * vmem_need, int(phys_vmem * 0.9)),
                         vmem_need + (4 << 20),
                         32 * 1024 * 1024))

    cost = pl.CostEstimate(
        flops=2 * num_graphs * n * d,
        transcendentals=0,
        bytes_accessed=(n * d * esize + n_pad * 4
                        + num_cores * num_graphs * (d + 1) * 4))

    partial_sums, partial_cnts = pl.pallas_call(
        kernel,
        out_shape=(
            jax.ShapeDtypeStruct((num_cores, num_graphs, d), jnp.float32),
            jax.ShapeDtypeStruct((num_cores, num_graphs, 1), jnp.float32),
        ),
        grid_spec=pltpu.PrefetchScalarGridSpec(
            num_scalar_prefetch=0,
            grid=(num_cores, tiles_per_core),
            in_specs=[
                pl.BlockSpec((tile, d), x_map),      # node_feat tile
                pl.BlockSpec((1, tile), seg_map),    # segment-id tile
            ],
            out_specs=[
                pl.BlockSpec((None, num_graphs, d), lambda c, t: (c, 0, 0)),
                pl.BlockSpec((None, num_graphs, 1), lambda c, t: (c, 0, 0)),
            ],
        ),
        compiler_params=pltpu.CompilerParams(
            dimension_semantics=("parallel", "arbitrary"),
            vmem_limit_bytes=vmem_limit,
        ),
        cost_estimate=cost,
    )(node_feat, seg_row)

    sums = partial_sums.sum(axis=0)                   # (B, D) f32
    if op == "sum":
        out = sums
    else:
        counts = partial_cnts.sum(axis=0)             # (B, 1)
        # Empty graphs: denominator clamped to 1 -> mean of 0 (documented).
        out = sums / jnp.maximum(counts, 1.0)
    return out.astype(node_feat.dtype)


class ReduceReadOut:
    """JAX/Pallas version of matgl's ReduceReadOut (no learnable parameters)."""

    # TODO(synk): the DGL batched-graph container has no Pallas equivalent; the
    # caller passes the feature matrix + per-row graph (segment) ids directly.
    def __init__(self, op: str = "mean", field: str = "node_feat"):
        self.op = op
        # 'node_feat' vs 'edge_feat' only selects which feature array the
        # caller hands in; the segment reduction itself is identical.
        self.field = field

    def __call__(self, feat, segment_ids, num_graphs, **kwargs):
        return reduce_readout(feat, segment_ids, num_graphs, op=self.op, **kwargs)


if __name__ == "__main__":
    key = jax.random.PRNGKey(0)

    # Batched "graph": 3 graphs with 250, 300, 113 nodes -> 663 nodes, D=32.
    num_graphs = 3
    nodes_per_graph = [250, 300, 113]
    n = sum(nodes_per_graph)
    d = 32

    node_feat = jax.random.normal(key, (n, d), dtype=jnp.float32)
    segment_ids = jnp.concatenate(
        [jnp.full((c,), g, dtype=jnp.int32) for g, c in enumerate(nodes_per_graph)]
    )

    # Pure-JAX reference (dgl.readout_nodes equivalent).
    sums_ref = jax.ops.segment_sum(node_feat, segment_ids, num_segments=num_graphs)
    counts_ref = jax.ops.segment_sum(
        jnp.ones((n,), jnp.float32), segment_ids, num_segments=num_graphs)
    mean_ref = sums_ref / counts_ref[:, None]

    # Mean readout with a small tile so the multi-tile accumulation path, the
    # ragged (masked) last tile, and both cores of the parallel split are hit.
    readout_mean = ReduceReadOut(op="mean", field="node_feat")
    out_mean = jax.block_until_ready(
        readout_mean(node_feat, segment_ids, num_graphs, node_tile=256))
    assert out_mean.shape == (num_graphs, d)
    assert jnp.allclose(out_mean, mean_ref, atol=1e-5, rtol=1e-5)

    # Sum readout with the automatic (D-aware) tile: single-tile-per-core path.
    readout_sum = ReduceReadOut(op="sum", field="node_feat")
    out_sum = jax.block_until_ready(readout_sum(node_feat, segment_ids, num_graphs))
    assert out_sum.shape == (num_graphs, d)
    assert jnp.allclose(out_sum, sums_ref, atol=1e-4, rtol=1e-5)

    # bf16 features exercise the bf16 MXU path and 128-multiple sublane tiling.
    node_feat_bf16 = node_feat.astype(jnp.bfloat16)
    out_sum_bf16 = jax.block_until_ready(
        reduce_readout(node_feat_bf16, segment_ids, num_graphs, op="sum",
                       node_tile=256))
    sums_bf16_ref = jax.ops.segment_sum(
        node_feat_bf16.astype(jnp.float32), segment_ids, num_segments=num_graphs)
    assert jnp.allclose(out_sum_bf16.astype(jnp.float32), sums_bf16_ref,
                        atol=2e-1, rtol=2e-2)

    print("KERNEL_OK")
</pallas_src>

<mosaic_0001>
module attributes {stable_mosaic.version = 11 : i64} {
  func.func @_segment_readout_kernel(%arg0: i32, %arg1: i32, %arg2: memref<256x32xf32, #tpu.memory_space<vmem>>, %arg3: memref<1x256xi32, #tpu.memory_space<vmem>>, %arg4: memref<1x3x32xf32, #tpu.memory_space<vmem>>, %arg5: memref<1x3x1xf32, #tpu.memory_space<vmem>>) attributes {dimension_semantics = [#tpu.dimension_semantics<parallel>, #tpu.dimension_semantics<arbitrary>], iteration_bounds = array<i64: 2, 2>, scalar_prefetch = 0 : i64, scratch_operands = 0 : i64, tpu.core_type = #tpu.core_type<tc>, window_params = [{transform_indices = @transform_0, window_bounds = array<i64: 256, 32>}, {transform_indices = @transform_1, window_bounds = array<i64: 1, 256>}, {transform_indices = @transform_2, window_bounds = array<i64: 1, 3, 32>}, {transform_indices = @transform_3, window_bounds = array<i64: 1, 3, 1>}]} {
    %c0_i32 = arith.constant 0 : i32
    %0 = arith.cmpi eq, %arg1, %c0_i32 : i32
    %1 = arith.extui %0 : i1 to i32
    %c0_i32_0 = arith.constant 0 : i32
    %2 = arith.cmpi ne, %1, %c0_i32_0 : i32
    scf.if %2 {
      %cst_11 = arith.constant 0.000000e+00 : f32
      %27 = vector.broadcast %cst_11 : f32 to vector<3x32xf32>
      %c0_12 = arith.constant 0 : index
      %c0_13 = arith.constant 0 : index
      %c0_14 = arith.constant 0 : index
      %28 = vector.load %arg4[%c0_12, %c0_13, %c0_14] : memref<1x3x32xf32, #tpu.memory_space<vmem>>, vector<1x3x32xf32>
      %29 = vector.shape_cast %28 : vector<1x3x32xf32> to vector<3x32xf32>
      %30 = vector.shape_cast %27 : vector<3x32xf32> to vector<1x3x32xf32>
      tpu.vector_store %arg4[%c0_12, %c0_13, %c0_14], %30 {strides = array<i32>} : memref<1x3x32xf32, #tpu.memory_space<vmem>>, vector<1x3x32xf32>,
      %cst_15 = arith.constant 0.000000e+00 : f32
      %31 = vector.broadcast %cst_15 : f32 to vector<3x1xf32>
      %c0_16 = arith.constant 0 : index
      %c0_17 = arith.constant 0 : index
      %c0_18 = arith.constant 0 : index
      %32 = vector.load %arg5[%c0_16, %c0_17, %c0_18] : memref<1x3x1xf32, #tpu.memory_space<vmem>>, vector<1x3x1xf32>
      %33 = vector.shape_cast %32 : vector<1x3x1xf32> to vector<3x1xf32>
      %34 = vector.shape_cast %31 : vector<3x1xf32> to vector<1x3x1xf32>
      tpu.vector_store %arg5[%c0_16, %c0_17, %c0_18], %34 {strides = array<i32>} : memref<1x3x1xf32, #tpu.memory_space<vmem>>, vector<1x3x1xf32>,
    } else {
    }
    %c0 = arith.constant 0 : index
    %c0_1 = arith.constant 0 : index
    %3 = vector.load %arg3[%c0, %c0_1] : memref<1x256xi32, #tpu.memory_space<vmem>>, vector<1x256xi32>
    %4 = tpu.iota {dimensions = array<i32: 0>} : vector<3x256xi32>
    %5 = vector.broadcast %3 : vector<1x256xi32> to vector<3x256xi32>
    %6 = arith.cmpi eq, %5, %4 : vector<3x256xi32>
    %7 = arith.extui %6 : vector<3x256xi1> to vector<3x256xi32>
    %8 = arith.sitofp %7 : vector<3x256xi32> to vector<3x256xf32>
    %c0_2 = arith.constant 0 : index
    %c0_3 = arith.constant 0 : index
    %c0_4 = arith.constant 0 : index
    %9 = vector.load %arg5[%c0_2, %c0_3, %c0_4] : memref<1x3x1xf32, #tpu.memory_space<vmem>>, vector<1x3x1xf32>
    %10 = vector.shape_cast %9 : vector<1x3x1xf32> to vector<3x1xf32>
    %cst = arith.constant dense<0.000000e+00> : vector<3xf32>
    %11 = vector.multi_reduction <add>, %8, %cst [1] : vector<3x256xf32> to vector<3xf32>
    %12 = vector.shape_cast %11 : vector<3xf32> to vector<3x1xf32>
    %13 = arith.addf %10, %12 : vector<3x1xf32>
    %c0_5 = arith.constant 0 : index
    %c0_6 = arith.constant 0 : index
    %c0_7 = arith.constant 0 : index
    %14 = vector.load %arg5[%c0_5, %c0_6, %c0_7] : memref<1x3x1xf32, #tpu.memory_space<vmem>>, vector<1x3x1xf32>
    %15 = vector.shape_cast %14 : vector<1x3x1xf32> to vector<3x1xf32>
    %16 = vector.shape_cast %13 : vector<3x1xf32> to vector<1x3x1xf32>
    tpu.vector_store %arg5[%c0_5, %c0_6, %c0_7], %16 {strides = array<i32>} : memref<1x3x1xf32, #tpu.memory_space<vmem>>, vector<1x3x1xf32>,
    %c2_i32 = arith.constant 2 : i32
    %17 = arith.muli %arg0, %c2_i32 : i32
    %18 = arith.addi %17, %arg1 : i32
    %c256_i32 = arith.constant 256 : i32
    %19 = arith.muli %18, %c256_i32 : i32
    %c256_i32_8 = arith.constant 256 : i32
    %20 = arith.addi %19, %c256_i32_8 : i32
    %c663_i32 = arith.constant 663 : i32
    %21 = arith.cmpi sgt, %20, %c663_i32 : i32
    %true = arith.constant true
    %22 = arith.xori %21, %true : i1
    %23 = arith.extui %22 : i1 to i32
    %c0_i32_9 = arith.constant 0 : i32
    %24 = arith.cmpi ne, %23, %c0_i32_9 : i32
    scf.if %24 {
      %c0_11 = arith.constant 0 : index
      %c0_12 = arith.constant 0 : index
      %27 = vector.load %arg2[%c0_11, %c0_12] : memref<256x32xf32, #tpu.memory_space<vmem>>, vector<256x32xf32>
      %c0_13 = arith.constant 0 : index
      %c0_14 = arith.constant 0 : index
      %c0_15 = arith.constant 0 : index
      %28 = vector.load %arg4[%c0_13, %c0_14, %c0_15] : memref<1x3x32xf32, #tpu.memory_space<vmem>>, vector<1x3x32xf32>
      %29 = vector.shape_cast %28 : vector<1x3x32xf32> to vector<3x32xf32>
      %cst_16 = arith.constant dense<0.000000e+00> : vector<3x32xf32>
      %30 = tpu.matmul %8, %27, %cst_16 {dimension_numbers = #tpu.dot_dimension_numbers<[1], [0], [0], [1], [0, 0, 1, 1], [], []>, precision = #tpu.contract_precision<fp32>} : vector<3x256xf32>, vector<256x32xf32>, vector<3x32xf32> -> vector<3x32xf32>
      %31 = arith.addf %29, %30 : vector<3x32xf32>
      %c0_17 = arith.constant 0 : index
      %c0_18 = arith.constant 0 : index
      %c0_19 = arith.constant 0 : index
      %32 = vector.load %arg4[%c0_17, %c0_18, %c0_19] : memref<1x3x32xf32, #tpu.memory_space<vmem>>, vector<1x3x32xf32>
      %33 = vector.shape_cast %32 : vector<1x3x32xf32> to vector<3x32xf32>
      %34 = vector.shape_cast %31 : vector<3x32xf32> to vector<1x3x32xf32>
      tpu.vector_store %arg4[%c0_17, %c0_18, %c0_19], %34 {strides = array<i32>} : memref<1x3x32xf32, #tpu.memory_space<vmem>>, vector<1x3x32xf32>,
    } else {
    }
    %25 = arith.extui %21 : i1 to i32
    %c0_i32_10 = arith.constant 0 : i32
    %26 = arith.cmpi ne, %25, %c0_i32_10 : i32
    scf.if %26 {
      %27 = tpu.iota {dimensions = array<i32: 0>} : vector<256x1xi32>
      %28 = vector.broadcast %19 : i32 to vector<256x1xi32>
      %29 = arith.addi %28, %27 : vector<256x1xi32>
      %c663_i32_11 = arith.constant 663 : i32
      %30 = vector.broadcast %c663_i32_11 : i32 to vector<256x1xi32>
      %31 = arith.cmpi slt, %29, %30 : vector<256x1xi32>
      %c0_12 = arith.constant 0 : index
      %c0_13 = arith.constant 0 : index
      %32 = vector.load %arg2[%c0_12, %c0_13] : memref<256x32xf32, #tpu.memory_space<vmem>>, vector<256x32xf32>
      %c0_i32_14 = arith.constant 0 : i32
      %33 = arith.sitofp %c0_i32_14 : i32 to f32
      %34 = vector.shape_cast %31 : vector<256x1xi1> to vector<256x1xi1>
      %35 = vector.broadcast %34 : vector<256x1xi1> to vector<256x32xi1>
      %36 = vector.broadcast %33 : f32 to vector<256x32xf32>
      %37 = arith.select %35, %32, %36 : vector<256x32xi1>, vector<256x32xf32>
      %c0_15 = arith.constant 0 : index
      %c0_16 = arith.constant 0 : index
      %c0_17 = arith.constant 0 : index
      %38 = vector.load %arg4[%c0_15, %c0_16, %c0_17] : memref<1x3x32xf32, #tpu.memory_space<vmem>>, vector<1x3x32xf32>
      %39 = vector.shape_cast %38 : vector<1x3x32xf32> to vector<3x32xf32>
      %cst_18 = arith.constant dense<0.000000e+00> : vector<3x32xf32>
      %40 = tpu.matmul %8, %37, %cst_18 {dimension_numbers = #tpu.dot_dimension_numbers<[1], [0], [0], [1], [0, 0, 1, 1], [], []>, precision = #tpu.contract_precision<fp32>} : vector<3x256xf32>, vector<256x32xf32>, vector<3x32xf32> -> vector<3x32xf32>
      %41 = arith.addf %39, %40 : vector<3x32xf32>
      %c0_19 = arith.constant 0 : index
      %c0_20 = arith.constant 0 : index
      %c0_21 = arith.constant 0 : index
      %42 = vector.load %arg4[%c0_19, %c0_20, %c0_21] : memref<1x3x32xf32, #tpu.memory_space<vmem>>, vector<1x3x32xf32>
      %43 = vector.shape_cast %42 : vector<1x3x32xf32> to vector<3x32xf32>
      %44 = vector.shape_cast %41 : vector<3x32xf32> to vector<1x3x32xf32>
      tpu.vector_store %arg4[%c0_19, %c0_20, %c0_21], %44 {strides = array<i32>} : memref<1x3x32xf32, #tpu.memory_space<vmem>>, vector<1x3x32xf32>,
    } else {
    }
    return
  }
  func.func @transform_0(%arg0: i32, %arg1: i32) -> (i32, i32) {
    %c2_i32 = arith.constant 2 : i32
    %0 = arith.muli %arg0, %c2_i32 : i32
    %1 = arith.addi %0, %arg1 : i32
    %c2_i32_0 = arith.constant 2 : i32
    %2 = arith.minsi %1, %c2_i32_0 : i32
    %c0_i32 = arith.constant 0 : i32
    %c0_i32_1 = arith.constant 0 : i32
    return %2, %c0_i32 : i32, i32
  }
  func.func @transform_1(%arg0: i32, %arg1: i32) -> (i32, i32) {
    %c2_i32 = arith.constant 2 : i32
    %0 = arith.muli %arg0, %c2_i32 : i32
    %1 = arith.addi %0, %arg1 : i32
    %c0_i32 = arith.constant 0 : i32
    %c0_i32_0 = arith.constant 0 : i32
    return %c0_i32, %1 : i32, i32
  }
  func.func @transform_2(%arg0: i32, %arg1: i32) -> (i32, i32, i32) {
    %c0_i32 = arith.constant 0 : i32
    %c0_i32_0 = arith.constant 0 : i32
    %c0_i32_1 = arith.constant 0 : i32
    return %arg0, %c0_i32, %c0_i32_0 : i32, i32, i32
  }
  func.func @transform_3(%arg0: i32, %arg1: i32) -> (i32, i32, i32) {
    %c0_i32 = arith.constant 0 : i32
    %c0_i32_0 = arith.constant 0 : i32
    %c0_i32_1 = arith.constant 0 : i32
    return %arg0, %c0_i32, %c0_i32_0 : i32, i32, i32
  }
}

</mosaic_0001>

<bundles_post_ra>
// kernel: tpu_custom_call.1
= control target key start
LH: loop header
LB: loop body
LE: loop exit
PB: predicated region body
PF: predicated region fallthrough
CT: control target
= control target key end

     0   :  { %s3363_s12 = smov 0   ;;  %s3365_s13 = smov 0   ;;  %s4425_s0 = inlined_call_operand.vmem [shape: f32[663,32], index: 0, kind: input, shape index: {}]   ;;  %s4426_s1 = inlined_call_operand.vmem [shape: s32[1,1024], index: 1, kind: input, shape index: {}]   ;;  %s4427_s2 = inlined_call_operand.vmem [shape: f32[2,3,32], index: 2, kind: output, shape index: {0}]   ;;  %s4428_s3 = inlined_call_operand.vmem [shape: f32[2,3,1], index: 3, kind: output, shape index: {1}]  }
   0x1   :  { %s3367_s14 = smov 0   ;;  %s3369_s15 = smov 0  }
   0x2   :  { %s3371_s16 = smov 0  }
   0x3 LB: > { %s23_s17 = sadd.s32 1, %s3329_s14  ;;  %s26_s18 = sadd.s32 1, %s3333_s15  ;;  %s3337_s16 = sphi %s3371_s16, %s14_s16   ;;  %s3333_s15 = sphi %s3369_s15, %s4626_s15   ;;  %s3329_s14 = sphi %s3367_s14, %s4625_s14   ;;  %s3325_s13 = sphi %s3365_s13, %s4624_s13   ;;  %s3321_s12 = sphi %s3363_s12, %s4623_s12  }
   0x4   : > { %p24_p0 = scmp.ge.s32.totalorder %s23_s17, 2  ;;  %p2422_p1 = scmp.ge.s32.totalorder %s3337_s16, 1 }
   0x5   : > { %p195_p2 = scmp.lt.s32.totalorder %s3337_s16, 5 }
   0x6   : > { %s4628_s17 = smov (%p24_p0, %s23_s17), 0  ;;  %s4630_s18 = smov (!%p24_p0, %s26_s18), %s3333_s15 }
   0x7   : > { %p196_p3 = pnand %p2422_p1, %p195_p2  ;;  %p28_p4 = scmp.ge.s32.totalorder %s4630_s18, 2 }
   0x9   : > { %s4632_s18 = smov (%p28_p4, %s4630_s18), 0  ;;  %199 = sbr.rel (%p196_p3) target bundleno = 917 (0x395), region = 28 }
  0x10   : > { %s2423_s19 = sshll.u32 %s3325_s13, 1  ;;  %p267_p7 = scmp.lt.s32.totalorder %s3325_s13, 1 }
  0x11   : > { %s3396_s20 = sadd.s32 %s3321_s12, %s2423_s19  ;;  %p2430_p9 = scmp.ne.s32.totalorder %s3321_s12, 0 }
  0x12   : > { %p238_p5 = scmp.lt.s32.totalorder %s3396_s20, 2  ;;  %s2427_s21 = sshll.u32 %s3396_s20, 1  ;;  %vm279_vm0 = vcmask (!%p2430_p9), 256000   ;;  %vm281_vm1 = vcmask (!%p2430_p9), 2048   ;;  %v3339_v0 = vmov (!%p2430_p9), 0.0  }
  0x13   : > { %p261_p6 = scmp.lt.s32.totalorder %s2427_s21, 7  ;;  %s4636_s13 = smov (!%p267_p7, %s3325_s13), 1 }
  0x14   : > { %s239_s22 = scalar_select %p238_p5, %s3396_s20, 2 }
  0x15   : > { %s4634_s21 = smov (!%p261_p6, %s2427_s21), 7  ;;  %s2428_s27 = sshll.u32 %s4636_s13, 2 }
  0x16   : > { %s2424_s23 = sshll.u32 %s239_s22, 5  ;;  %s263_s26 = scalar_lea.vmem %s4426_s1, %s4634_s21 }
  0x17   : > { %p245_p8 = scmp.lt.s32.totalorder %s2424_s23, 82  ;;  %s3407_s4 = scalar_lea.vmem %s4427_s2, %s2428_s27 }
  0x18   : > { %s3417_s10 = scalar_lea.vmem %s4428_s3, %s2428_s27  ;;  %278 = sbr.rel (%p2430_p9) target bundleno = 31 (0x1f), region = 32  ;;  %280 = vst.msk [vmem:[%s3407_s4] sm:$0x7] (!%p2430_p9), %vm279_vm0, %v3339_v0 }
  0x19   : > { %s4638_s23 = smov (!%p245_p8, %s2424_s23), 82  ;;  %282 = vst.msk [vmem:[%s3417_s10] sm:$0x7] (!%p2430_p9), %vm281_vm1, %v3339_v0 }
  0x1a   : > { %s2425_s28 = sshll.u32 %s4638_s23, 3 }
  0x1b   : > { %s3412_s7 = scalar_lea.vmem %s4425_s0, %s2425_s28 }
  0x1f PF: > { %v284_v1 = vlaneseq  ;;  %v283_v3 = vld [vmem:[%s263_s26] sm:$0x3]  ;;  %vm301_vm2 = vcmask 1042432   ;;  %v4526_v9 = vmov 0  ;;  %v3340_v10 = vmov 0.0   ;;  %s2434_s11 = sshll.u32 %s3396_s20, 8 }
  0x20   : > { %s3449_s12 = sadd.s32 256, %s2434_s11  ;;  %v300_v16 = vld [vmem:[%s3417_s10] sm:$0x7]  ;;  %vm308_vm5 = vcmask 2048  }
  0x21   : > { %v3422_v2 = vshrl.u32 %v284_v1, 7  ;;  %p2435_p10 = scmp.gt.s32.totalorder %s3449_s12, 663 }
  0x23   : > { %4523 = vst [vmem:[#allocation2_spill] sm:$0xff] %v3422_v2  ;;  %v288_v4 = vsub.s32 0, %v3422_v2  ;;  %v292_v5 = vsub.s32 1, %v3422_v2 }
  0x25   : > { %v289_v6 = vrot.slane %v283_v3, %v288_v4  ;;  %v293_v7 = vrot.slane %v283_v3, %v292_v5 }
  0x27   : > { %vm3427_vm3 = vcmp.eq.s32.totalorder %v289_v6, %v3422_v2  ;;  %vm3432_vm4 = vcmp.eq.s32.totalorder %v293_v7, %v3422_v2 }
  0x28   : > { %v4527_v9 = vsel %vm3432_vm4, 4294967295, %v4526_v9  ;;  %v3438_v11 = vsel %vm3427_vm3, 1.0, %v3340_v10  ;;  %v3442_v12 = vsel %vm3432_vm4, 1.0, %v3340_v10 }
  0x29   : > { %4528 = vst [vmem:[#allocation3_spill] sm:$0xff] %v4527_v9  ;;  %4529 = vst [vmem:[#allocation4_spill] sm:$0xff] %v3438_v11  ;;  %v302_v13 = vsel %vm301_vm2, %v3438_v11, 0.0  ;;  %v303_v14 = vsel %vm301_vm2, %v3442_v12, 0.0 }
  0x2a   : > { %4530 = vst [vmem:[#allocation5_spill] sm:$0xff] %v3442_v12  ;;  %v304_v15 = vadd.f32 %v303_v14, %v302_v13 }
  0x2c   : > { %305 = vadd.xlane.f32.xlu0 %v304_v15 }
  0xb6   : > { %318 = sbr.rel (%p2435_p10) target bundleno = 532 (0x214), region = 36 }
  0xb9   : > { %v306_v17 = vpop.xlane.xlu0 %305 }
  0xba   : > { %v307_v18 = vadd.f32 %v306_v17, %v300_v16 }
  0xbc   : > { %309 = vst.msk [vmem:[%s3417_s10] sm:$0x7] %vm308_vm5, %v307_v18 }
  0xbd   : > { %v335_v19 = vld [vmem:[%s3412_s7 + $0x80] sm:$0xff]  ;;  %v336_v20 = vld [vmem:[%s3412_s7 + $0x88] sm:$0xff]  ;;  %v337_v26 = vld [vmem:[%s3412_s7 + $0x90] sm:$0xff]  ;;  %v3462_v28 = vsub.f32 %v3442_v12, %v3442_v12  ;;  %v4429_v29 = vmov 1.0   ;;  %v3471_v35 = vsub.f32 %v3438_v11, %v3438_v11  ;;  %vm1215_vm6 = vcmask 256000  }
  0xbe   : > { %v319_v21 = vld [vmem:[%s3412_s7] sm:$0xff]  ;;  %v401_v22 = vand.u32 4294901760, %v335_v19  ;;  %v404_v23 = vand.u32 4294901760, %v336_v20  ;;  %v320_v24 = vld [vmem:[%s3412_s7 + $0x8] sm:$0xff]  ;;  %v338_v27 = vld [vmem:[%s3412_s7 + $0x98] sm:$0xff]  ;;  %2436 = vmatprep.mubr.msk.f32.mxu1 %vm3432_vm4, %v4429_v29  ;;  %v407_v31 = vand.u32 4294901760, %v337_v26 }
  0xbf   : > { %v353_v25 = vand.u32 4294901760, %v319_v21  ;;  %v356_v30 = vand.u32 4294901760, %v320_v24  ;;  %v410_v32 = vand.u32 4294901760, %v338_v27  ;;  %v321_v33 = vld [vmem:[%s3412_s7 + $0x10] sm:$0xff]  ;;  %v322_v34 = vld [vmem:[%s3412_s7 + $0x18] sm:$0xff]  ;;  %v339_v40 = vld [vmem:[%s3412_s7 + $0xa0] sm:$0xff] }
  0xc0   : > { %v3473_v36 = vpack.c.bf16 %v404_v23, %v401_v22  ;;  %v359_v38 = vand.u32 4294901760, %v321_v33  ;;  %v362_v39 = vand.u32 4294901760, %v322_v34  ;;  %v340_v41 = vld [vmem:[%s3412_s7 + $0xa8] sm:$0xff]  ;;  %v3485_v45 = vsub.f32 %v337_v26, %v407_v31  ;;  %v323_v46 = vld [vmem:[%s3412_s7 + $0x20] sm:$0xff]  ;;  %v341_v60 = vld [vmem:[%s3412_s7 + $0xb0] sm:$0xff] }
  0xc1   : > { %v3475_v37 = vsub.f32 %v319_v21, %v353_v25  ;;  %v3479_v42 = vpack.c.bf16 %v356_v30, %v353_v25  ;;  %v3481_v43 = vsub.f32 %v320_v24, %v356_v30  ;;  %v3483_v44 = vpack.c.bf16 %v410_v32, %v407_v31  ;;  %v324_v47 = vld [vmem:[%s3412_s7 + $0x28] sm:$0xff]  ;;  %v342_v1 = vld [vmem:[%s3412_s7 + $0xb8] sm:$0xff] }
  0xc2   : > { %2872 = vmatprep.subr.bf16.mxu0 %v3473_v36  ;;  %v3490_v48 = vsub.f32 %v338_v27, %v410_v32  ;;  %v3492_v49 = vpack.c.bf16 %v362_v39, %v359_v38  ;;  %v3494_v50 = vsub.f32 %v321_v33, %v359_v38  ;;  %v3496_v51 = vsub.f32 %v322_v34, %v362_v39  ;;  %v343_v38 = vld [vmem:[%s3412_s7 + $0xc0] sm:$0xff]  ;;  %v344_v39 = vld [vmem:[%s3412_s7 + $0xc8] sm:$0xff]  ;;  %v334_v2 = vld [vmem:[%s3412_s7 + $0x78] sm:$0xff] }
  0xc3   : > { %2874 = vmatpush3.bf16.msra.mxu0 %v3479_v42  ;;  %v413_v52 = vand.u32 4294901760, %v339_v40  ;;  %v416_v53 = vand.u32 4294901760, %v340_v41  ;;  %v3499_v54 = vsub.f32 %v335_v19, %v401_v22  ;;  %v3501_v55 = vsub.f32 %v336_v20, %v404_v23  ;;  %v325_v19 = vld [vmem:[%s3412_s7 + $0x30] sm:$0xff]  ;;  %v326_v20 = vld [vmem:[%s3412_s7 + $0x38] sm:$0xff] }
  0xc4   : > { %2876 = vmatprep.subr.bf16.mxu0 %v3483_v44  ;;  %v365_v56 = vand.u32 4294901760, %v323_v46  ;;  %v368_v57 = vand.u32 4294901760, %v324_v47  ;;  %v4443_v58 = vand.u32 4294901760, %v3475_v37  ;;  %v4441_v59 = vand.u32 4294901760, %v3481_v43 }
  0xc5   : > { %v3507_v61 = vpack.c.bf16 %v416_v53, %v413_v52  ;;  %v3509_v62 = vsub.f32 %v339_v40, %v413_v52  ;;  %v3511_v63 = vsub.f32 %v340_v41, %v416_v53  ;;  %v4446_v0 = vand.u32 4294901760, %v3499_v54  ;;  %v327_v52 = vld [vmem:[%s3412_s7 + $0x40] sm:$0xff] }
  0xc6   : > { %v4445_v3 = vand.u32 4294901760, %v3501_v55  ;;  %v3516_v4 = vpack.c.bf16 %v368_v57, %v365_v56  ;;  %v3518_v5 = vsub.f32 %v323_v46, %v365_v56  ;;  %v3520_v6 = vsub.f32 %v324_v47, %v368_v57 }
  0xc7   : > { %2878 = vmatpush3.bf16.msra.mxu0 %v3492_v49  ;;  %v580_v7 = vsub.f32 %v3499_v54, %v4446_v0  ;;  %v468_v10 = vsub.f32 %v3475_v37, %v4443_v58  ;;  %v475_v13 = vsub.f32 %v3481_v43, %v4441_v59  ;;  %v419_v14 = vand.u32 4294901760, %v341_v60  ;;  %v332_v59 = vld [vmem:[%s3412_s7 + $0x68] sm:$0xff]  ;;  %v349_v0 = vld [vmem:[%s3412_s7 + $0xf0] sm:$0xff] }
  0xc8   : > { %2880 = vmatprep.subr.bf16.mxu0 %v3507_v61  ;;  %v587_v15 = vsub.f32 %v3501_v55, %v4445_v3  ;;  %v422_v16 = vand.u32 4294901760, %v342_v1  ;;  %v4439_v17 = vand.u32 4294901760, %v3485_v45  ;;  %v4438_v18 = vand.u32 4294901760, %v3490_v48 }
  0xc9   : > { %v581_v21 = vand.u32 4294901760, %v580_v7  ;;  %v469_v22 = vand.u32 4294901760, %v468_v10  ;;  %v476_v23 = vand.u32 4294901760, %v475_v13  ;;  %v3540_v24 = vsub.f32 %v341_v60, %v419_v14 }
  0xca   : > { %v588_v25 = vand.u32 4294901760, %v587_v15  ;;  %v3542_v26 = vpack.c.bf16 %v422_v16, %v419_v14  ;;  %v3544_v27 = vsub.f32 %v342_v1, %v422_v16  ;;  %v594_v30 = vsub.f32 %v3485_v45, %v4439_v17  ;;  %v328_v14 = vld [vmem:[%s3412_s7 + $0x48] sm:$0xff] }
  0xcb   : > { %2882 = vmatpush3.bf16.msra.mxu0 %v3516_v4  ;;  %v2905_v31 = vpack.c.bf16 %v476_v23, %v469_v22  ;;  %v601_v32 = vsub.f32 %v3490_v48, %v4438_v18  ;;  %v371_v33 = vand.u32 4294901760, %v325_v19  ;;  %v374_v34 = vand.u32 4294901760, %v326_v20 }
  0xcc   : > { %v2903_v40 = vpack.c.bf16 %v588_v25, %v581_v21  ;;  %2884 = vmatprep.subr.bf16.mxu0 %v3542_v26  ;;  %v595_v41 = vand.u32 4294901760, %v594_v30  ;;  %v4436_v46 = vand.u32 4294901760, %v3494_v50  ;;  %v4435_v47 = vand.u32 4294901760, %v3496_v51 }
  0xcd   : > { %v602_v53 = vand.u32 4294901760, %v601_v32  ;;  %v3559_v56 = vpack.c.bf16 %v374_v34, %v371_v33  ;;  %v3561_v57 = vsub.f32 %v325_v19, %v371_v33  ;;  %v3563_v60 = vsub.f32 %v326_v20, %v374_v34  ;;  %v345_v34 = vld [vmem:[%s3412_s7 + $0xd0] sm:$0xff] }
  0xce   : > { %2904 = vmatprep.subr.bf16.mxu1 %v2903_v40  ;;  %v482_v1 = vsub.f32 %v3494_v50, %v4436_v46  ;;  %v489_v7 = vsub.f32 %v3496_v51, %v4435_v47  ;;  %v425_v10 = vand.u32 4294901760, %v343_v38  ;;  %v428_v13 = vand.u32 4294901760, %v344_v39  ;;  %v346_v40 = vld [vmem:[%s3412_s7 + $0xd8] sm:$0xff]  ;;  %v347_v46 = vld [vmem:[%s3412_s7 + $0xe0] sm:$0xff] }
  0xcf   : > { %2906 = vmatpush3.bf16.msra.mxu1 %v2905_v31  ;;  %v2907_v15 = vpack.c.bf16 %v602_v53, %v595_v41  ;;  %2886 = vmatpush3.bf16.msra.mxu0 %v3559_v56  ;;  %v4433_v16 = vand.u32 4294901760, %v3509_v62  ;;  %v4431_v19 = vand.u32 4294901760, %v3511_v63  ;;  %v377_v20 = vand.u32 4294901760, %v327_v52 }
  0xd0   : > { %v483_v21 = vand.u32 4294901760, %v482_v1  ;;  %v490_v22 = vand.u32 4294901760, %v489_v7  ;;  %v3575_v23 = vpack.c.bf16 %v428_v13, %v425_v10  ;;  %v3577_v25 = vsub.f32 %v343_v38, %v425_v10  ;;  %v329_v1 = vld [vmem:[%s3412_s7 + $0x50] sm:$0xff] }
  0xd1   : > { %2908 = vmatprep.subr.bf16.mxu1 %v2907_v15  ;;  %v3579_v30 = vsub.f32 %v344_v39, %v428_v13  ;;  %v608_v31 = vsub.f32 %v3509_v62, %v4433_v16  ;;  %v615_v32 = vsub.f32 %v3511_v63, %v4431_v19  ;;  %v380_v33 = vand.u32 4294901760, %v328_v14  ;;  %v330_v19 = vld [vmem:[%s3412_s7 + $0x58] sm:$0xff] }
  0xd2   : > { %v2909_v41 = vpack.c.bf16 %v490_v22, %v483_v21  ;;  %2888 = vmatprep.subr.bf16.mxu0 %v3575_v23  ;;  %v3590_v38 = vsub.f32 %v327_v52, %v377_v20  ;;  %v4432_v39 = vand.u32 4294901760, %v3518_v5  ;;  %v4434_v53 = vand.u32 4294901760, %v3520_v6 }
  0xd3   : > { %v609_v7 = vand.u32 4294901760, %v608_v31  ;;  %v616_v10 = vand.u32 4294901760, %v615_v32  ;;  %v3595_v13 = vpack.c.bf16 %v380_v33, %v377_v20  ;;  %v3597_v15 = vsub.f32 %v328_v14, %v380_v33 }
  0xd4   : > { %2910 = vmatpush3.bf16.msra.mxu1 %v2909_v41  ;;  %v496_v21 = vsub.f32 %v3518_v5, %v4432_v39  ;;  %v503_v52 = vsub.f32 %v3520_v6, %v4434_v53  ;;  %v431_v22 = vand.u32 4294901760, %v345_v34  ;;  %v434_v29 = vand.u32 4294901760, %v346_v40 }
  0xd5   : > { %v2911_v31 = vpack.c.bf16 %v616_v10, %v609_v7  ;;  %2890 = vmatpush3.bf16.msra.mxu0 %v3595_v13  ;;  %v4437_v14 = vand.u32 4294901760, %v3540_v24  ;;  %v4440_v20 = vand.u32 4294901760, %v3544_v27  ;;  %v383_v32 = vand.u32 4294901760, %v329_v1 }
  0xd6   : > { %v497_v33 = vand.u32 4294901760, %v496_v21  ;;  %v504_v41 = vand.u32 4294901760, %v503_v52  ;;  %v3609_v39 = vpack.c.bf16 %v434_v29, %v431_v22  ;;  %v3611_v16 = vsub.f32 %v345_v34, %v431_v22  ;;  %v348_v21 = vld [vmem:[%s3412_s7 + $0xe8] sm:$0xff]  ;;  %v331_v22 = vld [vmem:[%s3412_s7 + $0x60] sm:$0xff] }
  0xd7   : > { %2912 = vmatprep.subr.bf16.mxu1 %v2911_v31  ;;  %v3613_v53 = vsub.f32 %v346_v40, %v434_v29  ;;  %v622_v7 = vsub.f32 %v3540_v24, %v4437_v14  ;;  %v629_v10 = vsub.f32 %v3544_v27, %v4440_v20  ;;  %v386_v47 = vand.u32 4294901760, %v330_v19 }
  0xd8   : > { %v2913_v52 = vpack.c.bf16 %v504_v41, %v497_v33  ;;  %2892 = vmatprep.subr.bf16.mxu0 %v3609_v39  ;;  %v3624_v34 = vsub.f32 %v329_v1, %v383_v32  ;;  %v4442_v29 = vand.u32 4294901760, %v3561_v57  ;;  %v4444_v40 = vand.u32 4294901760, %v3563_v60 }
  0xd9   : > { %v623_v31 = vand.u32 4294901760, %v622_v7  ;;  %v630_v14 = vand.u32 4294901760, %v629_v10  ;;  %v3629_v18 = vpack.c.bf16 %v386_v47, %v383_v32  ;;  %v3631_v17 = vsub.f32 %v330_v19, %v386_v47 }
  0xda   : > { %2914 = vmatpush3.bf16.msra.mxu1 %v2913_v52  ;;  %v510_v33 = vsub.f32 %v3561_v57, %v4442_v29  ;;  %v517_v1 = vsub.f32 %v3563_v60, %v4444_v40  ;;  %v437_v41 = vand.u32 4294901760, %v347_v46  ;;  %v440_v20 = vand.u32 4294901760, %v348_v21 }
  0xdb   : > { %v2915_v7 = vpack.c.bf16 %v630_v14, %v623_v31  ;;  %2894 = vmatpush3.bf16.msra.mxu0 %v3629_v18  ;;  %v4447_v47 = vand.u32 4294901760, %v3577_v25  ;;  %v4450_v19 = vand.u32 4294901760, %v3579_v30  ;;  %v389_v32 = vand.u32 4294901760, %v331_v22 }
  0xdc   : > { %v511_v10 = vand.u32 4294901760, %v510_v33  ;;  %v518_v52 = vand.u32 4294901760, %v517_v1  ;;  %v3643_v29 = vpack.c.bf16 %v440_v20, %v437_v41  ;;  %v3645_v58 = vsub.f32 %v347_v46, %v437_v41  ;;  %v350_v33 = vld [vmem:[%s3412_s7 + $0xf8] sm:$0xff]  ;;  %v333_v41 = vld [vmem:[%s3412_s7 + $0x70] sm:$0xff] }
  0xdd   : > { %2916 = vmatprep.subr.bf16.mxu1 %v2915_v7  ;;  %v3647_v40 = vsub.f32 %v348_v21, %v440_v20  ;;  %v636_v14 = vsub.f32 %v3577_v25, %v4447_v47  ;;  %v643_v31 = vsub.f32 %v3579_v30, %v4450_v19  ;;  %v392_v3 = vand.u32 4294901760, %v332_v59 }
  0xde   : > { %4531 = vst [vmem:[#allocation6_spill] sm:$0xff] %v3643_v29  ;;  %v2917_v1 = vpack.c.bf16 %v518_v52, %v511_v10  ;;  %2896 = vmatprep.subr.bf16.mxu0 %v3643_v29  ;;  %v3658_v46 = vsub.f32 %v331_v22, %v389_v32  ;;  %v4456_v20 = vand.u32 4294901760, %v3590_v38  ;;  %v4459_v21 = vand.u32 4294901760, %v3597_v15 }
  0xdf   : > { %v637_v7 = vand.u32 4294901760, %v636_v14  ;;  %v644_v47 = vand.u32 4294901760, %v643_v31  ;;  %v3663_v11 = vpack.c.bf16 %v392_v3, %v389_v32  ;;  %v3665_v12 = vsub.f32 %v332_v59, %v392_v3 }
  0xe0   : > { %2918 = vmatpush3.bf16.msra.mxu1 %v2917_v1  ;;  %v524_v10 = vsub.f32 %v3590_v38, %v4456_v20  ;;  %v531_v22 = vsub.f32 %v3597_v15, %v4459_v21  ;;  %v443_v52 = vand.u32 4294901760, %v349_v0  ;;  %v446_v19 = vand.u32 4294901760, %v350_v33 }
  0xe1   : > { %4532 = vst [vmem:[#allocation7_spill] sm:$0xff] %v3663_v11  ;;  %v2919_v9 = vpack.c.bf16 %v644_v47, %v637_v7  ;;  %2898 = vmatpush3.bf16.msra.mxu0 %v3663_v11  ;;  %v4463_v32 = vand.u32 4294901760, %v3611_v16  ;;  %v4462_v59 = vand.u32 4294901760, %v3613_v53  ;;  %v395_v3 = vand.u32 4294901760, %v333_v41 }
  0xe2   : > { %v525_v14 = vand.u32 4294901760, %v524_v10  ;;  %v532_v31 = vand.u32 4294901760, %v531_v22  ;;  %v3677_v1 = vpack.c.bf16 %v446_v19, %v443_v52  ;;  %v3679_v20 = vsub.f32 %v349_v0, %v443_v52 }
  0xe3   : > { %2920 = vmatprep.subr.bf16.mxu1 %v2919_v9  ;;  %v3681_v29 = vsub.f32 %v350_v33, %v446_v19  ;;  %v650_v47 = vsub.f32 %v3611_v16, %v4463_v32  ;;  %v657_v7 = vsub.f32 %v3613_v53, %v4462_v59  ;;  %v398_v21 = vand.u32 4294901760, %v334_v2 }
  0xe4   : > { %4533 = vst [vmem:[#allocation8_spill] sm:$0xff] %v3677_v1  ;;  %v2921_v11 = vpack.c.bf16 %v532_v31, %v525_v14  ;;  %2900 = vmatprep.subr.bf16.mxu0 %v3677_v1  ;;  %v3690_v10 = vsub.f32 %v333_v41, %v395_v3  ;;  %v4465_v0 = vand.u32 4294901760, %v3624_v34  ;;  %v4464_v9 = vand.u32 4294901760, %v3631_v17 }
  0xe5   : > { %v651_v19 = vand.u32 4294901760, %v650_v47  ;;  %v658_v33 = vand.u32 4294901760, %v657_v7  ;;  %v3694_v22 = vpack.c.bf16 %v398_v21, %v395_v3  ;;  %v3696_v52 = vsub.f32 %v334_v2, %v398_v21 }
  0xe6   : > { %2922 = vmatpush3.bf16.msra.mxu1 %v2921_v11  ;;  %v538_v59 = vsub.f32 %v3624_v34, %v4465_v0  ;;  %v545_v41 = vsub.f32 %v3631_v17, %v4464_v9  ;;  %v4466_v14 = vand.u32 4294901760, %v3462_v28  ;;  %v4469_v31 = vand.u32 4294901760, %v3645_v58 }
  0xe7   : > { %4534 = vst [vmem:[#allocation9_spill] sm:$0xff] %v3694_v22  ;;  %v2923_v32 = vpack.c.bf16 %v658_v33, %v651_v19  ;;  %2902 = vmatpush3.bf16.msra.mxu0 %v3694_v22  ;;  %v4472_v3 = vand.u32 4294901760, %v3647_v40  ;;  %v2935_v2 = vpack.c.bf16 %v3501_v55, %v3499_v54  ;;  %v4473_v11 = vand.u32 4294901760, %v3471_v35 }
  0xe8   : > { %v539_v21 = vand.u32 4294901760, %v538_v59  ;;  %v546_v47 = vand.u32 4294901760, %v545_v41  ;;  %v451_v7 = vsub.f32 %v3462_v28, %v4466_v14  ;;  %v664_v9 = vsub.f32 %v3645_v58, %v4469_v31 }
  0xe9   : > { %2924 = vmatprep.subr.bf16.mxu1 %v2923_v32  ;;  %v671_v19 = vsub.f32 %v3647_v40, %v4472_v3  ;;  %2936 = vmatprep.subr.bf16.mxu0 %v2935_v2  ;;  %v457_v33 = vsub.f32 %v3471_v35, %v4473_v11  ;;  %v4474_v59 = vand.u32 4294901760, %v3658_v46  ;;  %v4475_v41 = vand.u32 4294901760, %v3665_v12 }
  0xea   : > { %v2925_v0 = vpack.c.bf16 %v546_v47, %v539_v21  ;;  %v452_v14 = vand.u32 4294901760, %v451_v7  ;;  %v665_v22 = vand.u32 4294901760, %v664_v9  ;;  %v2937_v31 = vpack.c.bf16 %v3481_v43, %v3475_v37 }
  0xeb   : > { %v672_v32 = vand.u32 4294901760, %v671_v19  ;;  %v458_v1 = vand.u32 4294901760, %v457_v33  ;;  %v552_v2 = vsub.f32 %v3658_v46, %v4474_v59  ;;  %v559_v3 = vsub.f32 %v3665_v12, %v4475_v41 }
  0xec   : > { %2926 = vmatpush3.bf16.msra.mxu1 %v2925_v0  ;;  %453 = vmatprep.mubr.f32.mxu0 %v452_v14  ;;  %v4478_v11 = vand.u32 4294901760, %v3679_v20  ;;  %v4476_v21 = vand.u32 4294901760, %v3681_v29  ;;  %v2939_v9 = vpack.c.bf16 %v3490_v48, %v3485_v45  ;;  %v4477_v47 = vand.u32 4294901760, %v3690_v10 }
  0xed   : > { %v2927_v7 = vpack.c.bf16 %v672_v32, %v665_v22  ;;  %459 = vmatmul.mubr.f32.vlgmr.msra.gmra.mrb[0].mxu0 %v458_v1  ;;  %v553_v19 = vand.u32 4294901760, %v552_v2  ;;  %v560_v33 = vand.u32 4294901760, %v559_v3  ;;  %v572_v59 = vand.u32 4294901760, %v3696_v52 }
  0xee   : > { %2938 = vmatpush3.bf16.msra.mxu0 %v2937_v31  ;;  %v678_v0 = vsub.f32 %v3679_v20, %v4478_v11  ;;  %v685_v14 = vsub.f32 %v3681_v29, %v4476_v21  ;;  %v566_v41 = vsub.f32 %v3690_v10, %v4477_v47  ;;  %v2941_v1 = vpack.c.bf16 %v3496_v51, %v3494_v50 }
  0xef   : > { %2928 = vmatprep.subr.bf16.mxu1 %v2927_v7  ;;  %v2929_v22 = vpack.c.bf16 %v560_v33, %v553_v19  ;;  %2940 = vmatprep.subr.bf16.mxu0 %v2939_v9  ;;  %v573_v31 = vsub.f32 %v3696_v52, %v572_v59  ;;  %v2943_v3 = vpack.c.bf16 %v3511_v63, %v3509_v62  ;;  %v4535_v33 = vand.u32 4294901760, %v3499_v54 }
  0xf0   : > { %v679_v32 = vand.u32 4294901760, %v678_v0  ;;  %v686_v2 = vand.u32 4294901760, %v685_v14  ;;  %v567_v21 = vand.u32 4294901760, %v566_v41  ;;  %826 = vmatprep.mubr.f32.mxu0 %v3462_v28  ;;  %v2945_v7 = vpack.c.bf16 %v3520_v6, %v3518_v5 }
  0xf1   : > { %2930 = vmatpush3.bf16.msra.mxu1 %v2929_v22  ;;  %v574_v47 = vand.u32 4294901760, %v573_v31  ;;  %v2947_v19 = vpack.c.bf16 %v3544_v27, %v3540_v24  ;;  %v4536_v0 = vand.u32 4294901760, %v3501_v55  ;;  %v4537_v14 = vand.u32 4294901760, %v3475_v37 }
  0xf2   : > { %v2931_v11 = vpack.c.bf16 %v686_v2, %v679_v32  ;;  %2942 = vmatpush3.bf16.msra.mxu0 %v2941_v1  ;;  %v4538_v22 = vand.u32 4294901760, %v3481_v43  ;;  %v4539_v1 = vand.u32 4294901760, %v3485_v45  ;;  %v4540_v32 = vand.u32 4294901760, %v3490_v48 }
  0xf3   : > { %v2933_v9 = vpack.c.bf16 %v574_v47, %v567_v21  ;;  %2944 = vmatprep.subr.bf16.mxu0 %v2943_v3  ;;  %v2999_v41 = vpack.c.bf16 %v4536_v0, %v4535_v33  ;;  %v4541_v47 = vand.u32 4294901760, %v3494_v50  ;;  %v4543_v54 = vand.u32 4294901760, %v3509_v62 }
  0xf4   : > { %2932 = vmatprep.subr.bf16.mxu1 %v2931_v11  ;;  %v3001_v31 = vpack.c.bf16 %v4538_v22, %v4537_v14  ;;  %v3003_v21 = vpack.c.bf16 %v4540_v32, %v4539_v1  ;;  %v4542_v11 = vand.u32 4294901760, %v3496_v51  ;;  %v4544_v55 = vand.u32 4294901760, %v3511_v63  ;;  %v4551_v14 = vld [vmem:[#allocation7_spill] sm:$0xff]  ;;  %v4552_v22 = vld [vmem:[#allocation8_spill] sm:$0xff] }
  0xf5   : > { %2934 = vmatpush3.bf16.msra.mxu1 %v2933_v9  ;;  %v4545_v37 = vand.u32 4294901760, %v3518_v5  ;;  %v4546_v43 = vand.u32 4294901760, %v3520_v6  ;;  %v2949_v45 = vpack.c.bf16 %v3563_v60, %v3561_v57  ;;  %v2951_v48 = vpack.c.bf16 %v3579_v30, %v3577_v25 }
  0xf6   : > { %v3005_v3 = vpack.c.bf16 %v4542_v11, %v4541_v47  ;;  %v3007_v2 = vpack.c.bf16 %v4544_v55, %v4543_v54  ;;  %2968 = vmatprep.subr.bf16.mxu1 %v3473_v36  ;;  %2946 = vmatpush3.bf16.msra.mxu0 %v2945_v7  ;;  %v4547_v50 = vmov 1.0   ;;  %v4548_v51 = vand.u32 4294901760, %v3462_v28  ;;  %v4555_v47 = vld [vmem:[#allocation9_spill] sm:$0xff] }
  0xf7   : > { %v3009_v33 = vpack.c.bf16 %v4546_v43, %v4545_v37  ;;  %2948 = vmatprep.subr.bf16.mxu0 %v2947_v19  ;;  %v2953_v62 = vpack.c.bf16 %v3597_v15, %v3590_v38  ;;  %v2955_v63 = vpack.c.bf16 %v3613_v53, %v3611_v16  ;;  %v2957_v5 = vpack.c.bf16 %v3631_v17, %v3624_v34  ;;  %v4549_v19 = vld [vmem:[#allocation6_spill] sm:$0xff] }
  0xf8   : > { %2437 = vmatmul.mubr.msk.f32.vlgmr.msra.gmra.mrb[0].mxu1 %vm3427_vm3, %v4547_v50  ;;  %v2959_v28 = vpack.c.bf16 %v3647_v40, %v3645_v58  ;;  %v2961_v6 = vpack.c.bf16 %v3665_v12, %v3658_v46  ;;  %v2963_v7 = vpack.c.bf16 %v3681_v29, %v3679_v20  ;;  %v2965_v9 = vpack.c.bf16 %v3696_v52, %v3690_v10 }
  0xf9   : > { %2970 = vmatpush3.bf16.msra.mxu1 %v3479_v42  ;;  %933 = vmatprep.mubr.f32.mxu1 %v4548_v51  ;;  %v4554_v1 = vand.u32 4294901760, %v3544_v27  ;;  %v4558_v54 = vand.u32 4294901760, %v3577_v25  ;;  %v4562_v27 = vand.u32 4294901760, %v3597_v15  ;;  %v4568_v15 = vand.u32 4294901760, %v3647_v40 }
  0xfa   : > { %2972 = vmatprep.subr.bf16.mxu1 %v3483_v44  ;;  %2950 = vmatpush3.bf16.msra.mxu0 %v2949_v45 }
  0xfb   : > { %2952 = vmatprep.subr.bf16.mxu0 %v2951_v48 }
  0xfd   : > { %2974 = vmatpush3.bf16.msra.mxu1 %v3492_v49 }
  0xfe   : > { %2976 = vmatprep.subr.bf16.mxu1 %v3507_v61  ;;  %2954 = vmatpush3.bf16.msra.mxu0 %v2953_v62 }
  0xff   : > { %2956 = vmatprep.subr.bf16.mxu0 %v2955_v63  ;;  %v351_v63 = vld [vmem:[%s3407_s4] sm:$0x7] }
 0x101   : > { %2978 = vmatpush3.bf16.msra.mxu1 %v3516_v4 }
 0x102   : > { %2980 = vmatprep.subr.bf16.mxu1 %v3542_v26  ;;  %2958 = vmatpush3.bf16.msra.mxu0 %v2957_v5 }
 0x103   : > { %2960 = vmatprep.subr.bf16.mxu0 %v2959_v28 }
 0x105   : > { %2982 = vmatpush3.bf16.msra.mxu1 %v3559_v56 }
 0x106   : > { %2984 = vmatprep.subr.bf16.mxu1 %v3575_v23  ;;  %2962 = vmatpush3.bf16.msra.mxu0 %v2961_v6 }
 0x107   : > { %2964 = vmatprep.subr.bf16.mxu0 %v2963_v7 }
 0x109   : > { %2986 = vmatpush3.bf16.msra.mxu1 %v3595_v13 }
 0x10a   : > { %2988 = vmatprep.subr.bf16.mxu1 %v3609_v39  ;;  %2966 = vmatpush3.bf16.msra.mxu0 %v2965_v9 }
 0x10b   : > { %3000 = vmatprep.subr.bf16.mxu0 %v2999_v41  ;;  %v4553_v41 = vand.u32 4294901760, %v3540_v24  ;;  %v4560_v24 = vand.u32 4294901760, %v3471_v35 }
 0x10d   : > { %2990 = vmatpush3.bf16.msra.mxu1 %v3629_v18  ;;  %829 = vmatmul.mubr.f32.vlgmr.msra.gmra.mrb[2].mxu0 %v3471_v35  ;;  %v3011_v32 = vpack.c.bf16 %v4554_v1, %v4553_v41  ;;  %v4564_v35 = vand.u32 4294901760, %v3613_v53  ;;  %v4572_v53 = vand.u32 4294901760, %v3681_v29 }
 0x10e   : > { %2992 = vmatprep.subr.bf16.mxu1 %v4549_v19  ;;  %3002 = vmatpush3.bf16.msra.mxu0 %v3001_v31  ;;  %v4556_v31 = vand.u32 4294901760, %v3561_v57 }
 0x10f   : > { %3004 = vmatprep.subr.bf16.mxu0 %v3003_v21  ;;  %2438 = vmatprep.mubr.msk.f32.mxu0 %vm3432_vm4, %v4547_v50  ;;  %v4557_v21 = vand.u32 4294901760, %v3563_v60  ;;  %v4563_v60 = vand.u32 4294901760, %v3611_v16 }
 0x111   : > { %2994 = vmatpush3.bf16.msra.mxu1 %v4551_v14  ;;  %v3013_v11 = vpack.c.bf16 %v4557_v21, %v4556_v31  ;;  %v3019_v25 = vpack.c.bf16 %v4564_v35, %v4563_v60 }
 0x112   : > { %2996 = vmatprep.subr.bf16.mxu1 %v4552_v22  ;;  %3006 = vmatpush3.bf16.msra.mxu0 %v3005_v3  ;;  %v4559_v3 = vand.u32 4294901760, %v3579_v30 }
 0x113   : > { %3008 = vmatprep.subr.bf16.mxu0 %v3007_v2 }
 0x114   : > { %v3015_v55 = vpack.c.bf16 %v4559_v3, %v4558_v54 }
 0x115   : > { %2998 = vmatpush3.bf16.msra.mxu1 %v4555_v47 }
 0x116   : > { %3032 = vmatprep.subr.bf16.mxu1 %v3473_v36  ;;  %3010 = vmatpush3.bf16.msra.mxu0 %v3009_v33  ;;  %v4561_v36 = vand.u32 4294901760, %v3590_v38  ;;  %v4567_v38 = vand.u32 4294901760, %v3645_v58  ;;  %v4573_v58 = vand.u32 4294901760, %v3690_v10 }
 0x117   : > { %3012 = vmatprep.subr.bf16.mxu0 %v3011_v32 }
 0x118   : > { %937 = vmatmul.mubr.f32.vlgmr.msra.gmra.mrb[2].mxu1 %v4560_v24  ;;  %v3017_v57 = vpack.c.bf16 %v4562_v27, %v4561_v36  ;;  %v3023_v2 = vpack.c.bf16 %v4568_v15, %v4567_v38 }
 0x119   : > { %3034 = vmatpush3.bf16.msra.mxu1 %v3479_v42  ;;  %2440 = vmatprep.mubr.msk.f32.mxu1 %vm3432_vm4, %v4547_v50  ;;  %v4565_v42 = vand.u32 4294901760, %v3624_v34 }
 0x11a   : > { %3036 = vmatprep.subr.bf16.mxu1 %v3483_v44  ;;  %3014 = vmatpush3.bf16.msra.mxu0 %v3013_v11  ;;  %v4566_v44 = vand.u32 4294901760, %v3631_v17  ;;  %v4571_v17 = vand.u32 4294901760, %v3679_v20 }
 0x11b   : > { %3016 = vmatprep.subr.bf16.mxu0 %v3015_v55 }
 0x11c   : > { %v3021_v30 = vpack.c.bf16 %v4566_v44, %v4565_v42  ;;  %v3027_v34 = vpack.c.bf16 %v4572_v53, %v4571_v17 }
 0x11d   : > { %3038 = vmatpush3.bf16.msra.mxu1 %v3492_v49  ;;  %v4569_v49 = vand.u32 4294901760, %v3658_v46 }
 0x11e   : > { %3040 = vmatprep.subr.bf16.mxu1 %v3507_v61  ;;  %3018 = vmatpush3.bf16.msra.mxu0 %v3017_v57  ;;  %v4570_v61 = vand.u32 4294901760, %v3665_v12 }
 0x11f   : > { %3020 = vmatprep.subr.bf16.mxu0 %v3019_v25 }
 0x120   : > { %v3025_v16 = vpack.c.bf16 %v4570_v61, %v4569_v49 }
 0x121   : > { %3042 = vmatpush3.bf16.msra.mxu1 %v3516_v4  ;;  %v3029_v4 = vpack.c.bf16 %v572_v59, %v4573_v58 }
 0x122   : > { %3044 = vmatprep.subr.bf16.mxu1 %v3542_v26  ;;  %3022 = vmatpush3.bf16.msra.mxu0 %v3021_v30 }
 0x123   : > { %3024 = vmatprep.subr.bf16.mxu0 %v3023_v2 }
 0x125   : > { %3046 = vmatpush3.bf16.msra.mxu1 %v3559_v56 }
 0x126   : > { %3048 = vmatprep.subr.bf16.mxu1 %v3575_v23  ;;  %3026 = vmatpush3.bf16.msra.mxu0 %v3025_v16 }
 0x127   : > { %3028 = vmatprep.subr.bf16.mxu0 %v3027_v34 }
 0x129   : > { %3050 = vmatpush3.bf16.msra.mxu1 %v3595_v13 }
 0x12a   : > { %3052 = vmatprep.subr.bf16.mxu1 %v3609_v39  ;;  %3030 = vmatpush3.bf16.msra.mxu0 %v3029_v4 }
 0x12d   : > { %3054 = vmatpush3.bf16.msra.mxu1 %v3629_v18  ;;  %2439 = vmatmul.mubr.msk.f32.vlgmr.msra.gmra.mrb[4].mxu0 %vm3427_vm3, %v4547_v50 }
 0x12e   : > { %3056 = vmatprep.subr.bf16.mxu1 %v4549_v19 }
 0x131   : > { %3058 = vmatpush3.bf16.msra.mxu1 %v4551_v14 }
 0x132   : > { %3060 = vmatprep.subr.bf16.mxu1 %v4552_v22 }
 0x135   : > { %3062 = vmatpush3.bf16.msra.mxu1 %v4555_v47 }
 0x138   : > { %2441 = vmatmul.mubr.msk.f32.vlgmr.msra.gmra.mrb[4].mxu1 %vm3427_vm3, %v4547_v50 }
 0x1c0   : > { %v2483_v12 = vpop.f32.mrb[0].mxu0 }
 0x1c1   : > { %v2484_v26 = vpop.f32.mrb[1].mxu0 }
 0x1c2   : > { %v2485_v56 = vadd.f32 %v2484_v26, %v2483_v12 }
 0x1cb   : > { %v2518_v18 = vpop.f32.mrb[0].mxu1 }
 0x1cc   : > { %v2519_v23 = vpop.f32.mrb[1].mxu1 }
 0x1cd   : > { %v2520_v39 = vadd.f32 %v2519_v23, %v2518_v18 }
 0x1cf   : > { %v693_v13 = vadd.f32 %v2520_v39, %v2485_v56 }
 0x1e0   : > { %v2553_v29 = vpop.f32.mrb[2].mxu0 }
 0x1e1   : > { %v2554_v40 = vpop.f32.mrb[3].mxu0 }
 0x1e2   : > { %v2555_v46 = vadd.f32 %v2554_v40, %v2553_v29 }
 0x1e4   : > { %v831_v20 = vadd.f32 %v2555_v46, %v693_v13 }
 0x1eb   : > { %v2588_v10 = vpop.f32.mrb[2].mxu1 }
 0x1ec   : > { %v2589_v52 = vpop.f32.mrb[3].mxu1 }
 0x1ed   : > { %v2590_v59 = vadd.f32 %v2589_v52, %v2588_v10 }
 0x1ef   : > { %v939_v37 = vadd.f32 %v2590_v59, %v831_v20 }
 0x200   : > { %v2623_v43 = vpop.f32.mrb[4].mxu0 }
 0x201   : > { %v2624_v33 = vpop.f32.mrb[5].mxu0 }
 0x202   : > { %v2625_v45 = vadd.f32 %v2624_v33, %v2623_v43 }
 0x204   : > { %v1107_v48 = vadd.f32 %v2625_v45, %v939_v37 }
 0x20b   : > { %v2658_v50 = vpop.f32.mrb[4].mxu1 }
 0x20c   : > { %v2659_v51 = vpop.f32.mrb[5].mxu1 }
 0x20d   : > { %v2660_v62 = vadd.f32 %v2659_v51, %v2658_v50 }
 0x20f   : > { %v1211_v5 = vadd.f32 %v2660_v62, %v1107_v48 }
 0x211   : > { %v1214_v28 = vadd.f32 %v1211_v5, %v351_v63 }
 0x213   : > { %1216 = vst.msk [vmem:[%s3407_s4] sm:$0x7] %vm1215_vm6, %v1214_v28 }
 0x214 PF: > { %p2442_p11 = scmp.le.s32.totalorder %s3449_s12, 663 }
 0x216   : > { %1219 = sbr.rel (%p2442_p11) target bundleno = 917 (0x395), region = 40 }
 0x21d   : > { %v4574_v6 = vld [vmem:[#allocation2_spill] sm:$0xff]  ;;  %v3901_v19 = vstv %s2434_s11  ;;  %v1333_v11 = vld [vmem:[%s3412_s7 + $0x88] sm:$0xff]  ;;  %v1334_v60 = vld [vmem:[%s3412_s7 + $0x90] sm:$0xff] }
 0x21e   : > { %v1235_v7 = vadd.s32 128, %v4574_v6  ;;  %v1236_v9 = vadd.s32 136, %v4574_v6  ;;  %v1220_v0 = vadd.s32 8, %v4574_v6  ;;  %v1252_v14 = vadd.s32 %v3901_v19, %v4574_v6  ;;  %v1316_v22 = vld [vmem:[%s3412_s7] sm:$0xff]  ;;  %v1317_v3 = vld [vmem:[%s3412_s7 + $0x8] sm:$0xff]  ;;  %v1335_v30 = vld [vmem:[%s3412_s7 + $0x98] sm:$0xff] }
 0x21f   : > { %v1237_v41 = vadd.s32 144, %v4574_v6  ;;  %v1238_v1 = vadd.s32 152, %v4574_v6  ;;  %v1221_v32 = vadd.s32 16, %v4574_v6  ;;  %v1332_v21 = vld [vmem:[%s3412_s7 + $0x80] sm:$0xff]  ;;  %v1222_v55 = vadd.s32 24, %v4574_v6  ;;  %v1318_v17 = vld [vmem:[%s3412_s7 + $0x10] sm:$0xff] }
 0x220   : > { %v1268_v47 = vadd.s32 %v3901_v19, %v1235_v7  ;;  %v1269_v31 = vadd.s32 %v3901_v19, %v1236_v9  ;;  %v1253_v54 = vadd.s32 %v3901_v19, %v1220_v0  ;;  %vm1284_vm7 = vcmp.lt.s32.totalorder %v1252_v14, 663  ;;  %v1319_v53 = vld [vmem:[%s3412_s7 + $0x18] sm:$0xff]  ;;  %v1336_v37 = vld [vmem:[%s3412_s7 + $0xa0] sm:$0xff]  ;;  %v1337_v43 = vld [vmem:[%s3412_s7 + $0xa8] sm:$0xff] }
 0x221   : > { %v1270_v24 = vadd.s32 %v3901_v19, %v1237_v41  ;;  %v1271_v36 = vadd.s32 %v3901_v19, %v1238_v1  ;;  %v1254_v27 = vadd.s32 %v3901_v19, %v1221_v32  ;;  %v1412_v57 = vsel %vm1284_vm7, %v1316_v22, 0.0  ;;  %v1320_v1 = vld [vmem:[%s3412_s7 + $0x20] sm:$0xff] }
 0x222   : > { %vm1300_vm8 = vcmp.lt.s32.totalorder %v1268_v47, 663  ;;  %vm1301_vm9 = vcmp.lt.s32.totalorder %v1269_v31, 663  ;;  %vm1285_vm10 = vcmp.lt.s32.totalorder %v1253_v54, 663  ;;  %v1446_v44 = vand.u32 4294901760, %v1412_v57  ;;  %v1321_v31 = vld [vmem:[%s3412_s7 + $0x28] sm:$0xff] }
 0x223   : > { %v1428_v35 = vsel %vm1300_vm8, %v1332_v21, 0.0  ;;  %v1429_v25 = vsel %vm1301_vm9, %v1333_v11, 0.0  ;;  %v1413_v42 = vsel %vm1285_vm10, %v1317_v3, 0.0  ;;  %vm1302_vm11 = vcmp.lt.s32.totalorder %v1270_v24, 663 }
 0x224   : > { %v1494_v38 = vand.u32 4294901760, %v1428_v35  ;;  %v1497_v15 = vand.u32 4294901760, %v1429_v25  ;;  %v1449_v2 = vand.u32 4294901760, %v1413_v42  ;;  %v3922_v49 = vsub.f32 %v1412_v57, %v1446_v44 }
 0x225   : > { %vm1303_vm12 = vcmp.lt.s32.totalorder %v1271_v36, 663  ;;  %v1430_v61 = vsel %vm1302_vm11, %v1334_v60, 0.0  ;;  %v1255_v16 = vadd.s32 %v3901_v19, %v1222_v55  ;;  %vm1286_vm13 = vcmp.lt.s32.totalorder %v1254_v27, 663 }
 0x226   : > { %v3927_v34 = vpack.c.bf16 %v1497_v15, %v1494_v38  ;;  %v3929_v58 = vpack.c.bf16 %v1449_v2, %v1446_v44  ;;  %v3931_v4 = vsub.f32 %v1413_v42, %v1449_v2  ;;  %v1431_v12 = vsel %vm1303_vm12, %v1335_v30, 0.0 }
 0x227   : > { %v1500_v26 = vand.u32 4294901760, %v1430_v61  ;;  %v1503_v56 = vand.u32 4294901760, %v1431_v12  ;;  %vm1287_vm14 = vcmp.lt.s32.totalorder %v1255_v16, 663  ;;  %v1414_v18 = vsel %vm1286_vm13, %v1318_v17, 0.0 }
 0x228   : > { %4575 = vst [vmem:[#allocation10_spill] sm:$0xff] %v3931_v4  ;;  %3064 = vmatprep.subr.bf16.mxu0 %v3927_v34  ;;  %v1415_v23 = vsel %vm1287_vm14, %v1319_v53, 0.0  ;;  %v1239_v39 = vadd.s32 160, %v4574_v6  ;;  %v1240_v13 = vadd.s32 168, %v4574_v6  ;;  %v1452_v20 = vand.u32 4294901760, %v1414_v18 }
 0x229   : > { %3066 = vmatpush3.bf16.msra.mxu0 %v3929_v58  ;;  %v3937_v29 = vpack.c.bf16 %v1503_v56, %v1500_v26  ;;  %v3939_v40 = vsub.f32 %v1430_v61, %v1500_v26  ;;  %v3941_v46 = vsub.f32 %v1431_v12, %v1503_v56  ;;  %v1455_v10 = vand.u32 4294901760, %v1415_v23  ;;  %v1338_v56 = vld [vmem:[%s3412_s7 + $0xb0] sm:$0xff] }
 0x22a   : > { %v1272_v52 = vadd.s32 %v3901_v19, %v1239_v39  ;;  %v1273_v59 = vadd.s32 %v3901_v19, %v1240_v13  ;;  %v3947_v33 = vsub.f32 %v1428_v35, %v1494_v38  ;;  %v3950_v45 = vsub.f32 %v1414_v18, %v1452_v20  ;;  %v1339_v18 = vld [vmem:[%s3412_s7 + $0xb8] sm:$0xff] }
 0x22b   : > { %3068 = vmatprep.subr.bf16.mxu0 %v3937_v29  ;;  %v3952_v48 = vsub.f32 %v1429_v25, %v1497_v15  ;;  %v1223_v50 = vadd.s32 32, %v4574_v6  ;;  %v1224_v51 = vadd.s32 40, %v4574_v6  ;;  %v3956_v62 = vpack.c.bf16 %v1455_v10, %v1452_v20 }
 0x22c   : > { %v3958_v63 = vsub.f32 %v1415_v23, %v1455_v10  ;;  %vm1304_vm15 = vcmp.lt.s32.totalorder %v1272_v52, 663  ;;  %vm1305_vm0 = vcmp.lt.s32.totalorder %v1273_v59, 663  ;;  %v4482_v7 = vand.u32 4294901760, %v3947_v33 }
 0x22d   : > { %v1432_v5 = vsel %vm1304_vm15, %v1336_v37, 0.0  ;;  %v1433_v28 = vsel %vm1305_vm0, %v1337_v43, 0.0  ;;  %v4481_v9 = vand.u32 4294901760, %v3952_v48  ;;  %3070 = vmatpush3.bf16.msra.mxu0 %v3956_v62  ;;  %v1256_v22 = vadd.s32 %v3901_v19, %v1223_v50 }
 0x22e   : > { %v1506_v0 = vand.u32 4294901760, %v1432_v5  ;;  %v1509_v14 = vand.u32 4294901760, %v1433_v28  ;;  %v1257_v41 = vadd.s32 %v3901_v19, %v1224_v51  ;;  %v1673_v32 = vsub.f32 %v3947_v33, %v4482_v7 }
 0x22f   : > { %v1680_v47 = vsub.f32 %v3952_v48, %v4481_v9  ;;  %v4480_v21 = vand.u32 4294901760, %v3922_v49  ;;  %v4479_v11 = vand.u32 4294901760, %v3931_v4  ;;  %vm1288_vm1 = vcmp.lt.s32.totalorder %v1256_v22, 663 }
 0x230   : > { %v3975_v54 = vpack.c.bf16 %v1509_v14, %v1506_v0  ;;  %v3977_v3 = vsub.f32 %v1432_v5, %v1506_v0  ;;  %v3979_v55 = vsub.f32 %v1433_v28, %v1509_v14  ;;  %v1674_v24 = vand.u32 4294901760, %v1673_v32  ;;  %v1322_v14 = vld [vmem:[%s3412_s7 + $0x30] sm:$0xff] }
 0x231   : > { %v1681_v36 = vand.u32 4294901760, %v1680_v47  ;;  %vm1289_vm2 = vcmp.lt.s32.totalorder %v1257_v41, 663  ;;  %v1416_v27 = vsel %vm1288_vm1, %v1320_v1, 0.0  ;;  %v1561_v35 = vsub.f32 %v3922_v49, %v4480_v21  ;;  %v1323_v41 = vld [vmem:[%s3412_s7 + $0x38] sm:$0xff] }
 0x232   : > { %3072 = vmatprep.subr.bf16.mxu0 %v3975_v54  ;;  %v1417_v57 = vsel %vm1289_vm2, %v1321_v31, 0.0  ;;  %v1458_v60 = vand.u32 4294901760, %v1416_v27  ;;  %v1568_v25 = vsub.f32 %v3931_v4, %v4479_v11  ;;  %v1241_v30 = vadd.s32 176, %v4574_v6  ;;  %v1327_v11 = vld [vmem:[%s3412_s7 + $0x58] sm:$0xff] }
 0x233   : > { %v3095_v42 = vpack.c.bf16 %v1681_v36, %v1674_v24  ;;  %v1461_v44 = vand.u32 4294901760, %v1417_v57  ;;  %v1242_v38 = vadd.s32 184, %v4574_v6  ;;  %v1562_v2 = vand.u32 4294901760, %v1561_v35 }
 0x234   : > { %v3990_v15 = vsub.f32 %v1416_v27, %v1458_v60  ;;  %v1569_v61 = vand.u32 4294901760, %v1568_v25  ;;  %v4500_v16 = vand.u32 4294901760, %v3939_v40  ;;  %v1274_v12 = vadd.s32 %v3901_v19, %v1241_v30 }
 0x235   : > { %3096 = vmatprep.subr.bf16.mxu1 %v3095_v42  ;;  %v3993_v17 = vpack.c.bf16 %v1461_v44, %v1458_v60  ;;  %v3995_v53 = vsub.f32 %v1417_v57, %v1461_v44  ;;  %v1275_v26 = vadd.s32 %v3901_v19, %v1242_v38  ;;  %v4498_v13 = vand.u32 4294901760, %v3941_v46 }
 0x236   : > { %v3097_v23 = vpack.c.bf16 %v1569_v61, %v1562_v2  ;;  %v1687_v39 = vsub.f32 %v3939_v40, %v4500_v16  ;;  %v1225_v20 = vadd.s32 48, %v4574_v6  ;;  %vm1306_vm5 = vcmp.lt.s32.totalorder %v1274_v12, 663  ;;  %v1340_v2 = vld [vmem:[%s3412_s7 + $0xc0] sm:$0xff]  ;;  %v4578_v16 = vld [vmem:[#allocation5_spill] sm:$0xff] }
 0x237   : > { %3074 = vmatpush3.bf16.msra.mxu0 %v3993_v17  ;;  %vm1307_vm6 = vcmp.lt.s32.totalorder %v1275_v26, 663  ;;  %v1226_v10 = vadd.s32 56, %v4574_v6  ;;  %v4496_v52 = vand.u32 4294901760, %v3950_v45  ;;  %v1434_v59 = vsel %vm1306_vm5, %v1338_v56, 0.0 }
 0x238   : > { %3098 = vmatpush3.bf16.msra.mxu1 %v3097_v23  ;;  %v1435_v37 = vsel %vm1307_vm6, %v1339_v18, 0.0  ;;  %v1688_v43 = vand.u32 4294901760, %v1687_v39  ;;  %v1694_v50 = vsub.f32 %v3941_v46, %v4498_v13  ;;  %v1512_v51 = vand.u32 4294901760, %v1434_v59  ;;  %v1341_v23 = vld [vmem:[%s3412_s7 + $0xc8] sm:$0xff]  ;;  %v1331_v13 = vld [vmem:[%s3412_s7 + $0x78] sm:$0xff] }
 0x239   : > { %v1515_v5 = vand.u32 4294901760, %v1435_v37  ;;  %v1258_v28 = vadd.s32 %v3901_v19, %v1225_v20  ;;  %v1259_v0 = vadd.s32 %v3901_v19, %v1226_v10  ;;  %v1575_v1 = vsub.f32 %v3950_v45, %v4496_v52 }
 0x23a   : > { %v1695_v22 = vand.u32 4294901760, %v1694_v50  ;;  %v4495_v32 = vand.u32 4294901760, %v3958_v63  ;;  %v1243_v47 = vadd.s32 192, %v4574_v6  ;;  %v4023_v24 = vsub.f32 %v1434_v59, %v1512_v51 }
 0x23b   : > { %v4021_v31 = vpack.c.bf16 %v1515_v5, %v1512_v51  ;;  %v4025_v36 = vsub.f32 %v1435_v37, %v1515_v5  ;;  %vm1290_vm7 = vcmp.lt.s32.totalorder %v1258_v28, 663  ;;  %vm1291_vm8 = vcmp.lt.s32.totalorder %v1259_v0, 663 }
 0x23c   : > { %v3099_v27 = vpack.c.bf16 %v1695_v22, %v1688_v43  ;;  %v1418_v57 = vsel %vm1290_vm7, %v1322_v14, 0.0  ;;  %v1576_v60 = vand.u32 4294901760, %v1575_v1  ;;  %v1419_v35 = vsel %vm1291_vm8, %v1323_v41, 0.0  ;;  %v1324_v1 = vld [vmem:[%s3412_s7 + $0x40] sm:$0xff] }
 0x23d   : > { %3076 = vmatprep.subr.bf16.mxu0 %v4021_v31  ;;  %v1464_v25 = vand.u32 4294901760, %v1418_v57  ;;  %v1582_v42 = vsub.f32 %v3958_v63, %v4495_v32  ;;  %v1244_v44 = vadd.s32 200, %v4574_v6  ;;  %v1467_v30 = vand.u32 4294901760, %v1419_v35 }
 0x23e   : > { %3100 = vmatprep.subr.bf16.mxu1 %v3099_v27  ;;  %v1276_v38 = vadd.s32 %v3901_v19, %v1243_v47  ;;  %v4494_v61 = vand.u32 4294901760, %v3977_v3  ;;  %v4491_v12 = vand.u32 4294901760, %v3979_v55  ;;  %v1227_v39 = vadd.s32 64, %v4574_v6 }
 0x23f   : > { %v4036_v26 = vsub.f32 %v1418_v57, %v1464_v25  ;;  %v1583_v56 = vand.u32 4294901760, %v1582_v42  ;;  %v1277_v18 = vadd.s32 %v3901_v19, %v1244_v44  ;;  %v4041_v20 = vpack.c.bf16 %v1467_v30, %v1464_v25 }
 0x240   : > { %v4043_v10 = vsub.f32 %v1419_v35, %v1467_v30  ;;  %vm1308_vm9 = vcmp.lt.s32.totalorder %v1276_v38, 663  ;;  %v1701_v59 = vsub.f32 %v3977_v3, %v4494_v61  ;;  %v1708_v50 = vsub.f32 %v3979_v55, %v4491_v12  ;;  %v1347_v61 = vld [vmem:[%s3412_s7 + $0xf8] sm:$0xff] }
 0x241   : > { %v3101_v37 = vpack.c.bf16 %v1583_v56, %v1576_v60  ;;  %vm1309_vm10 = vcmp.lt.s32.totalorder %v1277_v18, 663  ;;  %v1436_v43 = vsel %vm1308_vm9, %v1340_v2, 0.0  ;;  %3078 = vmatpush3.bf16.msra.mxu0 %v4041_v20  ;;  %v1228_v0 = vadd.s32 72, %v4574_v6  ;;  %v1325_v60 = vld [vmem:[%s3412_s7 + $0x48] sm:$0xff] }
 0x242   : > { %v1437_v51 = vsel %vm1309_vm10, %v1341_v23, 0.0  ;;  %v1518_v5 = vand.u32 4294901760, %v1436_v43  ;;  %v1702_v28 = vand.u32 4294901760, %v1701_v59  ;;  %v1709_v22 = vand.u32 4294901760, %v1708_v50 }
 0x243   : > { %3102 = vmatpush3.bf16.msra.mxu1 %v3101_v37  ;;  %v1521_v14 = vand.u32 4294901760, %v1437_v51  ;;  %v1260_v41 = vadd.s32 %v3901_v19, %v1227_v39  ;;  %v4490_v47 = vand.u32 4294901760, %v3990_v15  ;;  %v1261_v57 = vadd.s32 %v3901_v19, %v1228_v0  ;;  %v1342_v37 = vld [vmem:[%s3412_s7 + $0xd0] sm:$0xff] }
 0x244   : > { %v4056_v27 = vsub.f32 %v1436_v43, %v1518_v5  ;;  %v4488_v35 = vand.u32 4294901760, %v3995_v53  ;;  %v1245_v25 = vadd.s32 208, %v4574_v6  ;;  %v3103_v30 = vpack.c.bf16 %v1709_v22, %v1702_v28 }
 0x245   : > { %v4062_v42 = vpack.c.bf16 %v1521_v14, %v1518_v5  ;;  %v4064_v44 = vsub.f32 %v1437_v51, %v1521_v14  ;;  %vm1292_vm11 = vcmp.lt.s32.totalorder %v1260_v41, 663  ;;  %vm1293_vm12 = vcmp.lt.s32.totalorder %v1261_v57, 663  ;;  %v1343_v14 = vld [vmem:[%s3412_s7 + $0xd8] sm:$0xff] }
 0x246   : > { %v1420_v38 = vsel %vm1292_vm11, %v1324_v1, 0.0  ;;  %v1589_v2 = vsub.f32 %v3990_v15, %v4490_v47  ;;  %v1596_v56 = vsub.f32 %v3995_v53, %v4488_v35  ;;  %3104 = vmatprep.subr.bf16.mxu1 %v3103_v30  ;;  %v1421_v18 = vsel %vm1293_vm12, %v1325_v60, 0.0 }
 0x247   : > { %3080 = vmatprep.subr.bf16.mxu0 %v4062_v42  ;;  %v1470_v23 = vand.u32 4294901760, %v1420_v38  ;;  %v1246_v39 = vadd.s32 216, %v4574_v6  ;;  %v1278_v59 = vadd.s32 %v3901_v19, %v1245_v25  ;;  %v1473_v43 = vand.u32 4294901760, %v1421_v18 }
 0x248   : > { %v1590_v50 = vand.u32 4294901760, %v1589_v2  ;;  %v1597_v51 = vand.u32 4294901760, %v1596_v56  ;;  %v4486_v5 = vand.u32 4294901760, %v4023_v24  ;;  %v4485_v22 = vand.u32 4294901760, %v4025_v36 }
 0x249   : > { %v4077_v28 = vsub.f32 %v1420_v38, %v1470_v23  ;;  %v1279_v0 = vadd.s32 %v3901_v19, %v1246_v39  ;;  %vm1310_vm13 = vcmp.lt.s32.totalorder %v1278_v59, 663  ;;  %v4082_v41 = vpack.c.bf16 %v1473_v43, %v1470_v23 }
 0x24a   : > { %v4084_v1 = vsub.f32 %v1421_v18, %v1473_v43  ;;  %v3105_v57 = vpack.c.bf16 %v1597_v51, %v1590_v50  ;;  %v1438_v60 = vsel %vm1310_vm13, %v1342_v37, 0.0  ;;  %v1715_v30 = vsub.f32 %v4023_v24, %v4486_v5 }
 0x24b   : > { %vm1311_vm14 = vcmp.lt.s32.totalorder %v1279_v0, 663  ;;  %v1524_v25 = vand.u32 4294901760, %v1438_v60  ;;  %v1722_v38 = vsub.f32 %v4025_v36, %v4485_v22  ;;  %3082 = vmatpush3.bf16.msra.mxu0 %v4082_v41  ;;  %v1229_v56 = vadd.s32 80, %v4574_v6  ;;  %v1326_v0 = vld [vmem:[%s3412_s7 + $0x50] sm:$0xff] }
 0x24c   : > { %3106 = vmatpush3.bf16.msra.mxu1 %v3105_v57  ;;  %v1439_v2 = vsel %vm1311_vm14, %v1343_v14, 0.0  ;;  %v1230_v18 = vadd.s32 88, %v4574_v6  ;;  %v4483_v23 = vand.u32 4294901760, %v4036_v26  ;;  %v1716_v37 = vand.u32 4294901760, %v1715_v30 }
 0x24d   : > { %v1527_v39 = vand.u32 4294901760, %v1439_v2  ;;  %v4096_v59 = vsub.f32 %v1438_v60, %v1524_v25  ;;  %v1723_v43 = vand.u32 4294901760, %v1722_v38  ;;  %v1262_v50 = vadd.s32 %v3901_v19, %v1229_v56 }
 0x24e   : > { %v1263_v51 = vadd.s32 %v3901_v19, %v1230_v18  ;;  %v1603_v14 = vsub.f32 %v4036_v26, %v4483_v23  ;;  %v4484_v57 = vand.u32 4294901760, %v4043_v10  ;;  %v1247_v30 = vadd.s32 224, %v4574_v6  ;;  %v1345_v23 = vld [vmem:[%s3412_s7 + $0xe8] sm:$0xff] }
 0x24f   : > { %v4106_v21 = vpack.c.bf16 %v1527_v39, %v1524_v25  ;;  %v4108_v9 = vsub.f32 %v1439_v2, %v1527_v39  ;;  %v3107_v60 = vpack.c.bf16 %v1723_v43, %v1716_v37  ;;  %vm1294_vm15 = vcmp.lt.s32.totalorder %v1262_v50, 663  ;;  %v1344_v50 = vld [vmem:[%s3412_s7 + $0xe0] sm:$0xff] }
 0x250   : > { %vm1295_vm0 = vcmp.lt.s32.totalorder %v1263_v51, 663  ;;  %v1604_v38 = vand.u32 4294901760, %v1603_v14  ;;  %v1610_v56 = vsub.f32 %v4043_v10, %v4484_v57  ;;  %v1422_v18 = vsel %vm1294_vm15, %v1326_v0, 0.0 }
 0x251   : > { %3084 = vmatprep.subr.bf16.mxu0 %v4106_v21  ;;  %3108 = vmatprep.subr.bf16.mxu1 %v3107_v60  ;;  %v1423_v25 = vsel %vm1295_vm0, %v1327_v11, 0.0  ;;  %v1248_v2 = vadd.s32 232, %v4574_v6  ;;  %v1280_v39 = vadd.s32 %v3901_v19, %v1247_v30  ;;  %v1476_v37 = vand.u32 4294901760, %v1422_v18 }
 0x252   : > { %v1479_v43 = vand.u32 4294901760, %v1423_v25  ;;  %v1611_v7 = vand.u32 4294901760, %v1610_v56  ;;  %v4487_v51 = vand.u32 4294901760, %v4056_v27  ;;  %v4489_v57 = vand.u32 4294901760, %v4064_v44 }
 0x253   : > { %v1281_v14 = vadd.s32 %v3901_v19, %v1248_v2  ;;  %vm1312_vm1 = vcmp.lt.s32.totalorder %v1280_v39, 663  ;;  %v1231_v0 = vadd.s32 96, %v4574_v6  ;;  %v4125_v60 = vsub.f32 %v1422_v18, %v1476_v37 }
 0x254   : > { %v4123_v11 = vpack.c.bf16 %v1479_v43, %v1476_v37  ;;  %v4127_v30 = vsub.f32 %v1423_v25, %v1479_v43  ;;  %v3109_v22 = vpack.c.bf16 %v1611_v7, %v1604_v38  ;;  %v1440_v56 = vsel %vm1312_vm1, %v1344_v50, 0.0  ;;  %v1328_v38 = vld [vmem:[%s3412_s7 + $0x60] sm:$0xff] }
 0x255   : > { %vm1313_vm2 = vcmp.lt.s32.totalorder %v1281_v14, 663  ;;  %v1729_v2 = vsub.f32 %v4056_v27, %v4487_v51  ;;  %v1736_v39 = vsub.f32 %v4064_v44, %v4489_v57  ;;  %v1530_v18 = vand.u32 4294901760, %v1440_v56  ;;  %v1329_v57 = vld [vmem:[%s3412_s7 + $0x68] sm:$0xff] }
 0x256   : > { %3086 = vmatpush3.bf16.msra.mxu0 %v4123_v11  ;;  %3110 = vmatpush3.bf16.msra.mxu1 %v3109_v22  ;;  %v1441_v5 = vsel %vm1313_vm2, %v1345_v23, 0.0  ;;  %v1232_v25 = vadd.s32 104, %v4574_v6  ;;  %v1264_v7 = vadd.s32 %v3901_v19, %v1231_v0  ;;  %v4492_v14 = vand.u32 4294901760, %v4077_v28 }
 0x257   : > { %v1533_v37 = vand.u32 4294901760, %v1441_v5  ;;  %v1730_v43 = vand.u32 4294901760, %v1729_v2  ;;  %v1737_v50 = vand.u32 4294901760, %v1736_v39  ;;  %v4140_v51 = vsub.f32 %v1440_v56, %v1530_v18 }
 0x258   : > { %v1265_v35 = vadd.s32 %v3901_v19, %v1232_v25  ;;  %vm1296_vm5 = vcmp.lt.s32.totalorder %v1264_v7, 663  ;;  %v4493_v22 = vand.u32 4294901760, %v4084_v1  ;;  %v1617_v56 = vsub.f32 %v4077_v28, %v4492_v14 }
 0x259   : > { %v4145_v23 = vpack.c.bf16 %v1533_v37, %v1530_v18  ;;  %v4147_v47 = vsub.f32 %v1441_v5, %v1533_v37  ;;  %v3111_v12 = vpack.c.bf16 %v1737_v50, %v1730_v43  ;;  %v1424_v0 = vsel %vm1296_vm5, %v1328_v38, 0.0 }
 0x25a   : > { %vm1297_vm6 = vcmp.lt.s32.totalorder %v1265_v35, 663  ;;  %v1482_v2 = vand.u32 4294901760, %v1424_v0  ;;  %v1624_v39 = vsub.f32 %v4084_v1, %v4493_v22  ;;  %v1249_v5 = vadd.s32 240, %v4574_v6  ;;  %v1346_v22 = vld [vmem:[%s3412_s7 + $0xf0] sm:$0xff] }
 0x25b   : > { %4576 = vst [vmem:[#allocation11_spill] sm:$0xff] %v4145_v23  ;;  %3088 = vmatprep.subr.bf16.mxu0 %v4145_v23  ;;  %3112 = vmatprep.subr.bf16.mxu1 %v3111_v12  ;;  %v1425_v18 = vsel %vm1297_vm6, %v1329_v57, 0.0  ;;  %v1250_v25 = vadd.s32 248, %v4574_v6  ;;  %v4497_v35 = vand.u32 4294901760, %v4096_v59  ;;  %v1618_v37 = vand.u32 4294901760, %v1617_v56 }
 0x25c   : > { %v1485_v7 = vand.u32 4294901760, %v1425_v18  ;;  %v4159_v38 = vsub.f32 %v1424_v0, %v1482_v2  ;;  %v1625_v43 = vand.u32 4294901760, %v1624_v39  ;;  %v1282_v50 = vadd.s32 %v3901_v19, %v1249_v5 }
 0x25d   : > { %v1283_v14 = vadd.s32 %v3901_v19, %v1250_v25  ;;  %v1743_v12 = vsub.f32 %v4096_v59, %v4497_v35  ;;  %v4499_v57 = vand.u32 4294901760, %v4108_v9  ;;  %v1233_v56 = vadd.s32 112, %v4574_v6 }
 0x25e   : > { %v4169_v32 = vpack.c.bf16 %v1485_v7, %v1482_v2  ;;  %v4171_v52 = vsub.f32 %v1425_v18, %v1485_v7  ;;  %v3113_v0 = vpack.c.bf16 %v1625_v43, %v1618_v37  ;;  %vm1314_vm7 = vcmp.lt.s32.totalorder %v1282_v50, 663  ;;  %v1330_v50 = vld [vmem:[%s3412_s7 + $0x70] sm:$0xff] }
 0x25f   : > { %vm1315_vm8 = vcmp.lt.s32.totalorder %v1283_v14, 663  ;;  %v1744_v39 = vand.u32 4294901760, %v1743_v12  ;;  %v1750_v5 = vsub.f32 %v4108_v9, %v4499_v57  ;;  %v1442_v25 = vsel %vm1314_vm7, %v1346_v22, 0.0 }
 0x260   : > { %4577 = vst [vmem:[#allocation12_spill] sm:$0xff] %v4169_v32  ;;  %3090 = vmatpush3.bf16.msra.mxu0 %v4169_v32  ;;  %3114 = vmatpush3.bf16.msra.mxu1 %v3113_v0  ;;  %v1443_v2 = vsel %vm1315_vm8, %v1347_v61, 0.0  ;;  %v1234_v18 = vadd.s32 120, %v4574_v6  ;;  %v1266_v7 = vadd.s32 %v3901_v19, %v1233_v56  ;;  %v1536_v37 = vand.u32 4294901760, %v1442_v25  ;;  %v4581_v32 = vld [vmem:[#allocation4_spill] sm:$0xff] }
 0x261   : > { %v1539_v43 = vand.u32 4294901760, %v1443_v2  ;;  %v1751_v35 = vand.u32 4294901760, %v1750_v5  ;;  %v4502_v14 = vand.u32 4294901760, %v4125_v60  ;;  %v4501_v57 = vand.u32 4294901760, %v4127_v30 }
 0x262   : > { %v1267_v12 = vadd.s32 %v3901_v19, %v1234_v18  ;;  %vm1298_vm9 = vcmp.lt.s32.totalorder %v1266_v7, 663  ;;  %v4187_v22 = vsub.f32 %v4578_v16, %v4578_v16  ;;  %v4191_v6 = vsub.f32 %v1442_v25, %v1536_v37 }
 0x263   : > { %v4189_v61 = vpack.c.bf16 %v1539_v43, %v1536_v37  ;;  %v4193_v0 = vsub.f32 %v1443_v2, %v1539_v43  ;;  %v3115_v56 = vpack.c.bf16 %v1751_v35, %v1744_v39  ;;  %v1426_v5 = vsel %vm1298_vm9, %v1330_v50, 0.0 }
 0x264   : > { %vm1299_vm10 = vcmp.lt.s32.totalorder %v1267_v12, 663  ;;  %v1631_v19 = vsub.f32 %v4125_v60, %v4502_v14  ;;  %v1638_v18 = vsub.f32 %v4127_v30, %v4501_v57  ;;  %v1488_v7 = vand.u32 4294901760, %v1426_v5 }
 0x265   : > { %4579 = vst [vmem:[#allocation13_spill] sm:$0xff] %v4189_v61  ;;  %3092 = vmatprep.subr.bf16.mxu0 %v4189_v61  ;;  %3116 = vmatprep.subr.bf16.mxu1 %v3115_v56  ;;  %v1427_v16 = vsel %vm1299_vm10, %v1331_v13, 0.0  ;;  %v4507_v25 = vand.u32 4294901760, %v4187_v22  ;;  %v4508_v2 = vand.u32 4294901760, %v4140_v51  ;;  %v4509_v43 = vand.u32 4294901760, %v4147_v47 }
 0x266   : > { %v1491_v35 = vand.u32 4294901760, %v1427_v16  ;;  %v1632_v39 = vand.u32 4294901760, %v1631_v19  ;;  %v1639_v37 = vand.u32 4294901760, %v1638_v18  ;;  %v4205_v50 = vsub.f32 %v1426_v5, %v1488_v7 }
 0x267   : > { %v1544_v12 = vsub.f32 %v4187_v22, %v4507_v25  ;;  %v1757_v13 = vsub.f32 %v4140_v51, %v4508_v2  ;;  %v3127_v56 = vpack.c.bf16 %v3952_v48, %v3947_v33  ;;  %v1764_v5 = vsub.f32 %v4147_v47, %v4509_v43 }
 0x268   : > { %v4215_v57 = vpack.c.bf16 %v1491_v35, %v1488_v7  ;;  %v4217_v14 = vsub.f32 %v1427_v16, %v1491_v35  ;;  %v3117_v19 = vpack.c.bf16 %v1639_v37, %v1632_v39  ;;  %v4224_v25 = vsub.f32 %v4581_v32, %v4581_v32 }
 0x269   : > { %v1545_v18 = vand.u32 4294901760, %v1544_v12  ;;  %v1758_v61 = vand.u32 4294901760, %v1757_v13  ;;  %v4510_v2 = vand.u32 4294901760, %v4159_v38  ;;  %v1765_v7 = vand.u32 4294901760, %v1764_v5 }
 0x26a   : > { %4580 = vst [vmem:[#allocation14_spill] sm:$0xff] %v4215_v57  ;;  %4582 = vst [vmem:[#allocation15_spill] sm:$0xff] %v4224_v25  ;;  %3094 = vmatpush3.bf16.msra.mxu0 %v4215_v57  ;;  %3118 = vmatpush3.bf16.msra.mxu1 %v3117_v19  ;;  %v4511_v16 = vand.u32 4294901760, %v4171_v52  ;;  %v3129_v35 = vpack.c.bf16 %v3931_v4, %v3922_v49  ;;  %v4514_v39 = vand.u32 4294901760, %v4191_v6  ;;  %v4518_v37 = vand.u32 4294901760, %v4224_v25 }
 0x26b   : > { %1546 = vmatprep.mubr.f32.mxu0 %v1545_v18  ;;  %3128 = vmatprep.subr.bf16.mxu0 %v3127_v56  ;;  %v1645_v32 = vsub.f32 %v4159_v38, %v4510_v2  ;;  %v4519_v12 = vand.u32 4294901760, %v4193_v0  ;;  %v3119_v13 = vpack.c.bf16 %v1765_v7, %v1758_v61  ;;  %v1658_v18 = vand.u32 4294901760, %v4205_v50 }
 0x26c   : > { %v1652_v19 = vsub.f32 %v4171_v52, %v4511_v16  ;;  %v1771_v5 = vsub.f32 %v4191_v6, %v4514_v39  ;;  %v1550_v56 = vsub.f32 %v4224_v25, %v4518_v37  ;;  %v4522_v61 = vand.u32 4294901760, %v4217_v14 }
 0x26d   : > { %v1646_v43 = vand.u32 4294901760, %v1645_v32  ;;  %v1778_v2 = vsub.f32 %v4193_v0, %v4519_v12  ;;  %3120 = vmatprep.subr.bf16.mxu1 %v3119_v13  ;;  %v3131_v57 = vpack.c.bf16 %v3941_v46, %v3939_v40  ;;  %v1659_v39 = vsub.f32 %v4205_v50, %v1658_v18 }
 0x26e   : > { %v1653_v7 = vand.u32 4294901760, %v1652_v19  ;;  %v1772_v16 = vand.u32 4294901760, %v1771_v5  ;;  %v1551_v23 = vand.u32 4294901760, %v1550_v56  ;;  %v1666_v32 = vsub.f32 %v4217_v14, %v4522_v61 }
 0x26f   : > { %v1779_v4 = vand.u32 4294901760, %v1778_v2  ;;  %v1660_v12 = vand.u32 4294901760, %v1659_v39  ;;  %v3342_v25 = vmov 1.0   ;;  %v3133_v56 = vpack.c.bf16 %v3958_v63, %v3950_v45 }
 0x270   : > { %v3121_v37 = vpack.c.bf16 %v1653_v7, %v1646_v43  ;;  %2443 = vmatprep.mubr.msk.f32.mxu1 %vm3432_vm4, %v3342_v25  ;;  %1552 = vmatmul.mubr.f32.vlgmr.msra.gmra.mrb[0].mxu0 %v1551_v23  ;;  %v1667_v5 = vand.u32 4294901760, %v1666_v32  ;;  %v3135_v43 = vpack.c.bf16 %v3979_v55, %v3977_v3  ;;  %v3137_v39 = vpack.c.bf16 %v3995_v53, %v3990_v15 }
 0x271   : > { %v3123_v19 = vpack.c.bf16 %v1779_v4, %v1772_v16  ;;  %3130 = vmatpush3.bf16.msra.mxu0 %v3129_v35  ;;  %1919 = vmatprep.mubr.f32.mxu0 %v4187_v22  ;;  %v3139_v4 = vpack.c.bf16 %v4025_v36, %v4023_v24  ;;  %v4584_v23 = vand.u32 4294901760, %v3939_v40  ;;  %v4585_v16 = vand.u32 4294901760, %v3941_v46 }
 0x272   : > { %3122 = vmatpush3.bf16.msra.mxu1 %v3121_v37  ;;  %3132 = vmatprep.subr.bf16.mxu0 %v3131_v57  ;;  %v3125_v2 = vpack.c.bf16 %v1667_v5, %v1660_v12  ;;  %v4586_v37 = vand.u32 4294901760, %v3950_v45  ;;  %v4587_v57 = vand.u32 4294901760, %v3958_v63  ;;  %v4588_v7 = vand.u32 4294901760, %v3977_v3 }
 0x273   : > { %3124 = vmatprep.subr.bf16.mxu1 %v3123_v19  ;;  %v3195_v35 = vpack.c.bf16 %v4585_v16, %v4584_v23  ;;  %v4589_v32 = vand.u32 4294901760, %v3979_v55  ;;  %v4590_v5 = vand.u32 4294901760, %v3990_v15  ;;  %v4591_v61 = vand.u32 4294901760, %v3995_v53 }
 0x274   : > { %v3197_v12 = vpack.c.bf16 %v4587_v57, %v4586_v37  ;;  %v4592_v46 = vand.u32 4294901760, %v4023_v24  ;;  %v4593_v23 = vand.u32 4294901760, %v4025_v36  ;;  %v4594_v63 = vand.u32 4294901760, %v4036_v26 }
 0x275   : > { %v3199_v19 = vpack.c.bf16 %v4589_v32, %v4588_v7  ;;  %3134 = vmatpush3.bf16.msra.mxu0 %v3133_v56  ;;  %v3201_v40 = vpack.c.bf16 %v4591_v61, %v4590_v5  ;;  %v4595_v16 = vand.u32 4294901760, %v4043_v10  ;;  %v4596_v55 = vand.u32 4294901760, %v4056_v27 }
 0x276   : > { %3126 = vmatpush3.bf16.msra.mxu1 %v3125_v2  ;;  %v3203_v45 = vpack.c.bf16 %v4593_v23, %v4592_v46  ;;  %3136 = vmatprep.subr.bf16.mxu0 %v3135_v43  ;;  %v4597_v15 = vand.u32 4294901760, %v4064_v44  ;;  %v4598_v53 = vand.u32 4294901760, %v4077_v28  ;;  %v4599_v24 = vand.u32 4294901760, %v4084_v1 }
 0x277   : > { %v3205_v3 = vpack.c.bf16 %v4595_v16, %v4594_v63  ;;  %3160 = vmatprep.subr.bf16.mxu1 %v3927_v34  ;;  %v4600_v36 = vand.u32 4294901760, %v4096_v59  ;;  %v4601_v2 = vand.u32 4294901760, %v4108_v9  ;;  %v4602_v57 = vand.u32 4294901760, %v4125_v60  ;;  %v4610_v63 = vld [vmem:[#allocation11_spill] sm:$0xff] }
 0x278   : > { %v3207_v56 = vpack.c.bf16 %v4597_v15, %v4596_v55  ;;  %v3209_v61 = vpack.c.bf16 %v4599_v24, %v4598_v53  ;;  %v4603_v43 = vand.u32 4294901760, %v4127_v30  ;;  %v3141_v32 = vpack.c.bf16 %v4043_v10, %v4036_v26  ;;  %v4611_v16 = vld [vmem:[#allocation15_spill] sm:$0xff]  ;;  %v4612_v55 = vld [vmem:[#allocation12_spill] sm:$0xff]  ;;  %v1444_v24 = vld [vmem:[%s3407_s4] sm:$0x7] }
 0x279   : > { %v3211_v37 = vpack.c.bf16 %v4601_v2, %v4600_v36  ;;  %2444 = vmatmul.mubr.msk.f32.vlgmr.msra.gmra.mrb[0].mxu1 %vm3427_vm3, %v3342_v25  ;;  %3138 = vmatpush3.bf16.msra.mxu0 %v3137_v39  ;;  %v3143_v5 = vpack.c.bf16 %v4064_v44, %v4056_v27  ;;  %v4604_v46 = vand.u32 4294901760, %v4187_v22  ;;  %v3145_v39 = vpack.c.bf16 %v4084_v1, %v4077_v28  ;;  %v4608_v22 = vld [vmem:[#allocation10_spill] sm:$0xff] }
 0x27a   : > { %v4312_v7 = vpack.c.bf16 %v4603_v43, %v4602_v57  ;;  %3162 = vmatpush3.bf16.msra.mxu1 %v3929_v58  ;;  %3140 = vmatprep.subr.bf16.mxu0 %v3139_v4  ;;  %v3147_v26 = vpack.c.bf16 %v4108_v9, %v4096_v59  ;;  %v3149_v10 = vpack.c.bf16 %v4127_v30, %v4125_v60  ;;  %v4605_v1 = vand.u32 4294901760, %v3947_v33  ;;  %v4613_v33 = vld [vmem:[#allocation13_spill] sm:$0xff] }
 0x27b   : > { %3164 = vmatprep.subr.bf16.mxu1 %v3937_v29  ;;  %2026 = vmatprep.mubr.f32.mxu1 %v4604_v46  ;;  %v3151_v27 = vpack.c.bf16 %v4147_v47, %v4140_v51  ;;  %v3153_v44 = vpack.c.bf16 %v4171_v52, %v4159_v38  ;;  %v3155_v9 = vpack.c.bf16 %v4193_v0, %v4191_v6  ;;  %v4606_v59 = vand.u32 4294901760, %v3952_v48  ;;  %v4614_v48 = vld [vmem:[#allocation14_spill] sm:$0xff] }
 0x27c   : > { %v3157_v28 = vpack.c.bf16 %v4217_v14, %v4205_v50  ;;  %v4607_v30 = vand.u32 4294901760, %v3922_v49  ;;  %v4609_v4 = vand.u32 4294901760, %v4608_v22  ;;  %v4615_v49 = vand.u32 4294901760, %v4611_v16 }
 0x27d   : > { %3142 = vmatpush3.bf16.msra.mxu0 %v3141_v32  ;;  %v3191_v60 = vpack.c.bf16 %v4606_v59, %v4605_v1  ;;  %v4619_v13 = vand.u32 4294901760, %v4171_v52 }
 0x27e   : > { %3166 = vmatpush3.bf16.msra.mxu1 %v3956_v62  ;;  %3144 = vmatprep.subr.bf16.mxu0 %v3143_v5  ;;  %v3193_v23 = vpack.c.bf16 %v4609_v4, %v4607_v30 }
 0x27f   : > { %3168 = vmatprep.subr.bf16.mxu1 %v3975_v54 }
 0x281   : > { %3146 = vmatpush3.bf16.msra.mxu0 %v3145_v39 }
 0x282   : > { %3170 = vmatpush3.bf16.msra.mxu1 %v3993_v17  ;;  %3148 = vmatprep.subr.bf16.mxu0 %v3147_v26 }
 0x283   : > { %3172 = vmatprep.subr.bf16.mxu1 %v4021_v31 }
 0x285   : > { %3150 = vmatpush3.bf16.msra.mxu0 %v3149_v10 }
 0x286   : > { %3174 = vmatpush3.bf16.msra.mxu1 %v4041_v20  ;;  %3152 = vmatprep.subr.bf16.mxu0 %v3151_v27 }
 0x287   : > { %3176 = vmatprep.subr.bf16.mxu1 %v4062_v42 }
 0x289   : > { %3154 = vmatpush3.bf16.msra.mxu0 %v3153_v44 }
 0x28a   : > { %3178 = vmatpush3.bf16.msra.mxu1 %v4082_v41  ;;  %3156 = vmatprep.subr.bf16.mxu0 %v3155_v9 }
 0x28b   : > { %3180 = vmatprep.subr.bf16.mxu1 %v4106_v21 }
 0x28d   : > { %3158 = vmatpush3.bf16.msra.mxu0 %v3157_v28 }
 0x28e   : > { %3182 = vmatpush3.bf16.msra.mxu1 %v4123_v11  ;;  %3192 = vmatprep.subr.bf16.mxu0 %v3191_v60 }
 0x28f   : > { %3184 = vmatprep.subr.bf16.mxu1 %v4610_v63 }
 0x290   : > { %1922 = vmatmul.mubr.f32.vlgmr.msra.gmra.mrb[2].mxu0 %v4611_v16 }
 0x291   : > { %3194 = vmatpush3.bf16.msra.mxu0 %v3193_v23  ;;  %2445 = vmatprep.mubr.msk.f32.mxu0 %vm3432_vm4, %v3342_v25 }
 0x292   : > { %3186 = vmatpush3.bf16.msra.mxu1 %v4612_v55  ;;  %3196 = vmatprep.subr.bf16.mxu0 %v3195_v35 }
 0x293   : > { %3188 = vmatprep.subr.bf16.mxu1 %v4613_v33 }
 0x295   : > { %3198 = vmatpush3.bf16.msra.mxu0 %v3197_v12 }
 0x296   : > { %3190 = vmatpush3.bf16.msra.mxu1 %v4614_v48  ;;  %3200 = vmatprep.subr.bf16.mxu0 %v3199_v19 }
 0x297   : > { %3224 = vmatprep.subr.bf16.mxu1 %v3927_v34  ;;  %v4616_v34 = vand.u32 4294901760, %v4140_v51 }
 0x299   : > { %2030 = vmatmul.mubr.f32.vlgmr.msra.gmra.mrb[2].mxu1 %v4615_v49  ;;  %3202 = vmatpush3.bf16.msra.mxu0 %v3201_v40 }
 0x29a   : > { %3226 = vmatpush3.bf16.msra.mxu1 %v3929_v58  ;;  %3204 = vmatprep.subr.bf16.mxu0 %v3203_v45  ;;  %v4617_v58 = vand.u32 4294901760, %v4147_v47 }
 0x29b   : > { %3228 = vmatprep.subr.bf16.mxu1 %v3937_v29  ;;  %2447 = vmatprep.mubr.msk.f32.mxu1 %vm3432_vm4, %v3342_v25 }
 0x29c   : > { %v3215_v29 = vpack.c.bf16 %v4617_v58, %v4616_v34 }
 0x29d   : > { %3206 = vmatpush3.bf16.msra.mxu0 %v3205_v3 }
 0x29e   : > { %3230 = vmatpush3.bf16.msra.mxu1 %v3956_v62  ;;  %3208 = vmatprep.subr.bf16.mxu0 %v3207_v56  ;;  %v4618_v62 = vand.u32 4294901760, %v4159_v38 }
 0x29f   : > { %3232 = vmatprep.subr.bf16.mxu1 %v3975_v54 }
 0x2a0   : > { %v3217_v54 = vpack.c.bf16 %v4619_v13, %v4618_v62 }
 0x2a1   : > { %3210 = vmatpush3.bf16.msra.mxu0 %v3209_v61 }
 0x2a2   : > { %3234 = vmatpush3.bf16.msra.mxu1 %v3993_v17  ;;  %3212 = vmatprep.subr.bf16.mxu0 %v3211_v37  ;;  %v4620_v17 = vand.u32 4294901760, %v4191_v6 }
 0x2a3   : > { %3236 = vmatprep.subr.bf16.mxu1 %v4021_v31  ;;  %v4621_v31 = vand.u32 4294901760, %v4193_v0 }
 0x2a5   : > { %3214 = vmatpush3.bf16.msra.mxu0 %v4312_v7  ;;  %v3219_v51 = vpack.c.bf16 %v4621_v31, %v4620_v17 }
 0x2a6   : > { %3238 = vmatpush3.bf16.msra.mxu1 %v4041_v20  ;;  %3216 = vmatprep.subr.bf16.mxu0 %v3215_v29  ;;  %v4622_v20 = vand.u32 4294901760, %v4217_v14 }
 0x2a7   : > { %3240 = vmatprep.subr.bf16.mxu1 %v4062_v42 }
 0x2a8   : > { %v3221_v47 = vpack.c.bf16 %v4622_v20, %v1658_v18 }
 0x2a9   : > { %3218 = vmatpush3.bf16.msra.mxu0 %v3217_v54 }
 0x2aa   : > { %3242 = vmatpush3.bf16.msra.mxu1 %v4082_v41  ;;  %3220 = vmatprep.subr.bf16.mxu0 %v3219_v51 }
 0x2ab   : > { %3244 = vmatprep.subr.bf16.mxu1 %v4106_v21 }
 0x2ad   : > { %3222 = vmatpush3.bf16.msra.mxu0 %v3221_v47 }
 0x2ae   : > { %3246 = vmatpush3.bf16.msra.mxu1 %v4123_v11 }
 0x2af   : > { %3248 = vmatprep.subr.bf16.mxu1 %v4610_v63 }
 0x2b0   : > { %2446 = vmatmul.mubr.msk.f32.vlgmr.msra.gmra.mrb[4].mxu0 %vm3427_vm3, %v3342_v25 }
 0x2b2   : > { %3250 = vmatpush3.bf16.msra.mxu1 %v4612_v55 }
 0x2b3   : > { %3252 = vmatprep.subr.bf16.mxu1 %v4613_v33 }
 0x2b6   : > { %3254 = vmatpush3.bf16.msra.mxu1 %v4614_v48 }
 0x2b9   : > { %2448 = vmatmul.mubr.msk.f32.vlgmr.msra.gmra.mrb[4].mxu1 %vm3427_vm3, %v3342_v25  ;;  %vm2308_vm3 = vcmask 256000  }
 0x343   : > { %v2693_v21 = vpop.f32.mrb[0].mxu0 }
 0x344   : > { %v2694_v52 = vpop.f32.mrb[1].mxu0 }
 0x345   : > { %v2695_v42 = vadd.f32 %v2694_v52, %v2693_v21 }
 0x34c   : > { %v2728_v41 = vpop.f32.mrb[0].mxu1 }
 0x34d   : > { %v2729_v11 = vpop.f32.mrb[1].mxu1 }
 0x34e   : > { %v2730_v38 = vadd.f32 %v2729_v11, %v2728_v41 }
 0x350   : > { %v1786_v14 = vadd.f32 %v2730_v38, %v2695_v42 }
 0x363   : > { %v2763_v6 = vpop.f32.mrb[2].mxu0 }
 0x364   : > { %v2764_v0 = vpop.f32.mrb[3].mxu0 }
 0x365   : > { %v2765_v50 = vadd.f32 %v2764_v0, %v2763_v6 }
 0x367   : > { %v1924_v18 = vadd.f32 %v2765_v50, %v1786_v14 }
 0x36c   : > { %v2798_v35 = vpop.f32.mrb[2].mxu1 }
 0x36d   : > { %v2799_v12 = vpop.f32.mrb[3].mxu1 }
 0x36e   : > { %v2800_v19 = vadd.f32 %v2799_v12, %v2798_v35 }
 0x370   : > { %v2032_v40 = vadd.f32 %v2800_v19, %v1924_v18 }
 0x383   : > { %v2833_v45 = vpop.f32.mrb[4].mxu0 }
 0x384   : > { %v2834_v8 = vpop.f32.mrb[5].mxu0 }
 0x385   : > { %v2835_v25 = vadd.f32 %v2834_v8, %v2833_v45 }
 0x387   : > { %v2200_v3 = vadd.f32 %v2835_v25, %v2032_v40 }
 0x38c   : > { %v2868_v15 = vpop.f32.mrb[4].mxu1 }
 0x38d   : > { %v2869_v56 = vpop.f32.mrb[5].mxu1 }
 0x38e   : > { %v2870_v53 = vadd.f32 %v2869_v56, %v2868_v15 }
 0x390   : > { %v2304_v61 = vadd.f32 %v2870_v53, %v2200_v3 }
 0x392   : > { %v2307_v36 = vadd.f32 %v2304_v61, %v1444_v24 }
 0x394   : > { %2309 = vst.msk [vmem:[%s3407_s4] sm:$0x7] %vm2308_vm3, %v2307_v36 }
 0x395 PF: > { %s14_s16 = sadd.s32 1, %s3337_s16   ;;  %s4623_s12 = smov %s3329_s14 }
 0x396   : > { %p11_p12 = scmp.ge.s32.totalorder %s14_s16, 6   ;;  %s4624_s13 = smov %s3333_s15 }
 0x397   : > { %s4625_s14 = smov %s4628_s17  ;;  %s4626_s15 = smov %s4632_s18 }
 0x398   :  { %13 = sbr.rel (!%p11_p12) target bundleno = 3 (0x3), region = 85 }

</bundles_post_ra>
